<compile_context>
chip_gen: v6e
topology: v6e:2x2x1
jax: 0.10.0
libtpu: 0.0.40
codegen_flags: <defaults>
</compile_context>

<pallas_src>
import jax
import jax.numpy as jnp
from jax.experimental import pallas as pl
from jax.experimental.pallas import tpu as pltpu

I_SIZE = 2   # LSTM input_size
H_SIZE = 4   # LSTM hidden_size
O_SIZE = 2   # fc output features


def _param_layout(B):
    """Row offsets of each parameter block inside the packed (nrows, 4H) buffer."""
    B2 = 2 * B
    off_wih = 0                       # (2I, 4H)   stacked [fwd; bwd] input weights (ifo cols pre-scaled 0.5)
    off_bias = off_wih + 2 * I_SIZE   # (2B, 4H)   fused b_ih+b_hh: rows 0:B fwd / B:2B bwd
    off_whh = off_bias + B2           # (H*2B, 4H) recurrent weight rows, direction-packed
    off_fcw = off_whh + B2 * H_SIZE   # (2H, 4H)   fc weight (only first O_SIZE lanes used)
    off_fcb = off_fcw + 2 * H_SIZE    # (1, 4H)    fc bias   (only first O_SIZE lanes used)
    nrows = off_fcb + 1
    nrows_pad = ((nrows + 7) // 8) * 8
    return off_wih, off_bias, off_whh, off_fcw, off_fcb, nrows_pad


def _bilstm_fc_kernel(x_ref, p_ref, out_ref):
    # x_ref : (T, 2B, 2I)  time-major, direction-packed input
    #           rows 0:B  hold x[:, s]      in columns 0:I   (zeros elsewhere)
    #           rows B:2B hold x[:, T-1-s]  in columns I:2I  (zeros elsewhere)
    # p_ref : (nrows, 4H) packed parameters (see _param_layout)
    # out   : (B, T, O)
    T, B2, _ = x_ref.shape
    B = B2 // 2
    H = H_SIZE
    G = 4 * H
    O = O_SIZE
    H3 = 3 * H
    off_wih, off_bias, off_whh, off_fcw, off_fcb, _ = _param_layout(B)

    p = p_ref[...]                                   # single load of all parameters

    # ---- input projection for every step / both directions: K = 2I VPU broadcast-FMAs,
    #      bias folded in, entirely off the serial recurrence chain (no MXU) ----
    xp = x_ref[...]                                  # (T, 2B, 2I)
    zx = jnp.broadcast_to(p[off_bias:off_bias + B2][None, :, :], (T, B2, G))
    for k in range(2 * I_SIZE):
        zx = zx + xp[:, :, k:k + 1] * p[off_wih + k:off_wih + k + 1].reshape(1, 1, G)

    # direction-packed recurrent weight rows, hoisted out of the time loop:
    # whh_rows[k] is (2B, 4H) with rows 0:B = W_hh_fwd[k, :] and rows B:2B = W_hh_bwd[k, :]
    whh_rows = [p[off_whh + k * B2:off_whh + (k + 1) * B2] for k in range(H)]

    def cell(z, h, c):
        # z += h @ W_hh^T for BOTH directions at once, tree-reduced (serial add depth 2)
        terms = [h[:, k:k + 1] * whh_rows[k] for k in range(H)]
        while len(terms) > 1:
            nxt = [terms[i] + terms[i + 1] for i in range(0, len(terms) - 1, 2)]
            if len(terms) % 2:
                nxt.append(terms[-1])
            terms = nxt
        z = z + terms[0]
        # one tanh over all 4 gate blocks; i/f/o columns were pre-scaled by 0.5 so
        # sigmoid(x) = 0.5*tanh(0.5*x) + 0.5 needs only a cheap affine fix-up.
        t = jnp.tanh(z)
        ifo = 0.5 * t[:, :H3] + 0.5
        i_g = ifo[:, 0 * H:1 * H]
        f_g = ifo[:, 1 * H:2 * H]
        o_g = ifo[:, 2 * H:H3]
        g_g = t[:, H3:]
        c_new = f_g * c + i_g * g_g
        h_new = o_g * jnp.tanh(c_new)
        return h_new, c_new

    # fused bidirectional recurrence: one cell per step services both directions
    # (fwd at time s in rows 0:B, bwd at time T-1-s in rows B:2B).
    # TODO(synk): for much larger T switch to lax.fori_loop(unroll=2..4) with carried
    # state in scratch to bound vreg live ranges; full unroll is right at T=8.
    zero = jnp.zeros((B2, H), jnp.float32)
    h, c = zero, zero
    hs = []
    for s in range(T):
        h, c = cell(zx[s], h, c)
        hs.append(h)

    # ---- FC + sigmoid epilogue: VPU broadcast-FMAs, output built directly in (B, T, O) ----
    hf = jnp.stack(hs, axis=1)[0:B]                                    # (B, T, H) fwd states
    hb = jnp.stack([hs[T - 1 - t] for t in range(T)], axis=1)[B:B2]    # (B, T, H) bwd states
    fcw = p[off_fcw:off_fcw + 2 * H, 0:O]                              # (2H, O)
    fcb = p[off_fcb:off_fcb + 1, 0:O]                                  # (1, O)
    acc = jnp.broadcast_to(fcb.reshape(1, 1, O), (B, T, O))
    for k in range(H):
        acc = acc + hf[:, :, k:k + 1] * fcw[k:k + 1].reshape(1, 1, O)
        acc = acc + hb[:, :, k:k + 1] * fcw[H + k:H + k + 1].reshape(1, 1, O)
    out_ref[...] = jax.nn.sigmoid(acc)


def init_params(key):
    """Deterministic parameters matching the PyTorch module's shapes."""
    H, I, F_IN, F_OUT = H_SIZE, I_SIZE, 2 * H_SIZE, O_SIZE
    k_lstm = float(H) ** -0.5
    k_fc = float(F_IN) ** -0.5
    ks = jax.random.split(key, 10)
    u = lambda k, shape, bound: jax.random.uniform(k, shape, jnp.float32, -bound, bound)
    return {
        "weight_ih_f": u(ks[0], (4 * H, I), k_lstm),
        "weight_hh_f": u(ks[1], (4 * H, H), k_lstm),
        "bias_ih_f":   u(ks[2], (4 * H,), k_lstm),
        "bias_hh_f":   u(ks[3], (4 * H,), k_lstm),
        "weight_ih_b": u(ks[4], (4 * H, I), k_lstm),
        "weight_hh_b": u(ks[5], (4 * H, H), k_lstm),
        "bias_ih_b":   u(ks[6], (4 * H,), k_lstm),
        "bias_hh_b":   u(ks[7], (4 * H,), k_lstm),
        "fc_weight":   u(ks[8], (F_OUT, F_IN), k_fc),
        "fc_bias":     u(ks[9], (F_OUT,), k_fc),
    }


def _reorder_gates(a):
    """Reorder the leading 4H gate axis from PyTorch's [i, f, g, o] to [i, f, o, g]."""
    H = H_SIZE
    return jnp.concatenate([a[0:2 * H], a[3 * H:4 * H], a[2 * H:3 * H]], axis=0)


def _scale_ifo(w):
    """Pre-scale the i/f/o gate columns by 0.5 for the sigmoid-via-tanh rewrite."""
    H = H_SIZE
    scale = jnp.concatenate([jnp.full((3 * H,), 0.5, jnp.float32),
                             jnp.ones((H,), jnp.float32)])
    return w * scale


@jax.jit
def rnn_forward(x, params):
    """x: (B, T, 2) float32 -> (B, T, 2) float32  == sigmoid(fc(bi-LSTM(x)))."""
    B, T, _ = x.shape
    H = H_SIZE
    G = 4 * H
    B2 = 2 * B

    # gate permutation to [i,f,o,g], bias fusion, transpose to (in, 4H), 0.5 ifo pre-scale
    wih_f = _scale_ifo(_reorder_gates(params["weight_ih_f"]).T)                    # (I, 4H)
    wih_b = _scale_ifo(_reorder_gates(params["weight_ih_b"]).T)                    # (I, 4H)
    whh_f = _scale_ifo(_reorder_gates(params["weight_hh_f"]).T)                    # (H, 4H)
    whh_b = _scale_ifo(_reorder_gates(params["weight_hh_b"]).T)                    # (H, 4H)
    b_f = _scale_ifo(_reorder_gates(params["bias_ih_f"] + params["bias_hh_f"]))    # (4H,)
    b_b = _scale_ifo(_reorder_gates(params["bias_ih_b"] + params["bias_hh_b"]))    # (4H,)

    # ---- pack ALL parameters into one (nrows, 4H) f32 buffer (2 input DMAs total) ----
    off_wih, off_bias, off_whh, off_fcw, off_fcb, nrows = _param_layout(B)
    wih_stack = jnp.concatenate([wih_f, wih_b], axis=0)                            # (2I, 4H)
    bias_packed = jnp.concatenate([jnp.broadcast_to(b_f, (B, G)),
                                   jnp.broadcast_to(b_b, (B, G))], axis=0)         # (2B, 4H)
    whh_rows = jnp.concatenate([jnp.broadcast_to(whh_f[:, None, :], (H, B, G)),
                                jnp.broadcast_to(whh_b[:, None, :], (H, B, G))],
                               axis=1).reshape(H * B2, G)                          # (H*2B, 4H)
    fcw = params["fc_weight"].T                                                    # (2H, 2)
    fcb = params["fc_bias"]                                                        # (2,)

    pbuf = jnp.zeros((nrows, G), jnp.float32)
    pbuf = pbuf.at[off_wih:off_wih + 2 * I_SIZE].set(wih_stack)
    pbuf = pbuf.at[off_bias:off_bias + B2].set(bias_packed)
    pbuf = pbuf.at[off_whh:off_whh + H * B2].set(whh_rows)
    pbuf = pbuf.at[off_fcw:off_fcw + 2 * H, 0:O_SIZE].set(fcw)
    pbuf = pbuf.at[off_fcb, 0:O_SIZE].set(fcb)

    # ---- time-major, direction-packed input (layout plumbing only, done on the host) ----
    x_tm = jnp.transpose(x.astype(jnp.float32), (1, 0, 2))                         # (T, B, I)
    zeros = jnp.zeros_like(x_tm)
    x_packed = jnp.concatenate(
        [jnp.concatenate([x_tm, zeros], axis=-1),                    # fwd rows: [x(s)     | 0]
         jnp.concatenate([zeros, x_tm[::-1]], axis=-1)],             # bwd rows: [0 | x(T-1-s)]
        axis=1)                                                      # (T, 2B, 2I)

    vmem = pl.BlockSpec(memory_space=pltpu.MemorySpace.VMEM)
    out = pl.pallas_call(
        _bilstm_fc_kernel,
        out_shape=jax.ShapeDtypeStruct((B, T, O_SIZE), jnp.float32),
        in_specs=[vmem, vmem],
        out_specs=vmem,
    )(x_packed, pbuf)
    return out                                                       # (B, T, 2)


def rnn_reference(x, params):
    """Pure-JAX reference mirroring torch.nn.LSTM(bidirectional) + Linear + Sigmoid."""
    B, T, _ = x.shape
    H = H_SIZE

    def run_dir(wih, whh, bih, bhh, reverse):
        h = jnp.zeros((B, H), jnp.float32)
        c = jnp.zeros((B, H), jnp.float32)
        order = range(T - 1, -1, -1) if reverse else range(T)
        outs = [None] * T
        for t in order:
            z = x[:, t, :] @ wih.T + h @ whh.T + bih + bhh
            i_g = jax.nn.sigmoid(z[:, 0 * H:1 * H])
            f_g = jax.nn.sigmoid(z[:, 1 * H:2 * H])
            g_g = jnp.tanh(z[:, 2 * H:3 * H])
            o_g = jax.nn.sigmoid(z[:, 3 * H:4 * H])
            c = f_g * c + i_g * g_g
            h = o_g * jnp.tanh(c)
            outs[t] = h
        return jnp.stack(outs, axis=1)  # (B, T, H)

    rf = run_dir(params["weight_ih_f"], params["weight_hh_f"],
                 params["bias_ih_f"], params["bias_hh_f"], reverse=False)
    rb = run_dir(params["weight_ih_b"], params["weight_hh_b"],
                 params["bias_ih_b"], params["bias_hh_b"], reverse=True)
    r_out = jnp.concatenate([rf, rb], axis=-1)                       # (B, T, 2H)
    out = r_out @ params["fc_weight"].T + params["fc_bias"]
    return jax.nn.sigmoid(out)


if __name__ == "__main__":
    key = jax.random.PRNGKey(0)
    k_param, k_x = jax.random.split(key)
    params = init_params(k_param)

    B, T = 2, 8
    x = jax.random.normal(k_x, (B, T, I_SIZE), dtype=jnp.float32)

    out = jax.block_until_ready(rnn_forward(x, params))
    ref = jax.block_until_ready(rnn_reference(x, params))

    assert out.shape == (B, T, O_SIZE), out.shape
    assert jnp.allclose(out, ref, atol=1e-4, rtol=1e-4), float(jnp.max(jnp.abs(out - ref)))

    print("KERNEL_OK")
</pallas_src>

<mosaic_0001>
module attributes {stable_mosaic.version = 11 : i64} {
  func.func @_bilstm_fc_kernel(%arg0: memref<8x4x4xf32, #tpu.memory_space<vmem>>, %arg1: memref<40x16xf32, #tpu.memory_space<vmem>>, %arg2: memref<2x8x2xf32, #tpu.memory_space<vmem>>) attributes {dimension_semantics = [], scalar_prefetch = 0 : i64, scratch_operands = 0 : i64, tpu.core_type = #tpu.core_type<tc>} {
    %c0 = arith.constant 0 : index
    %c0_0 = arith.constant 0 : index
    %0 = vector.load %arg1[%c0, %c0_0] : memref<40x16xf32, #tpu.memory_space<vmem>>, vector<40x16xf32>
    %c0_1 = arith.constant 0 : index
    %c0_2 = arith.constant 0 : index
    %c0_3 = arith.constant 0 : index
    %1 = vector.load %arg0[%c0_1, %c0_2, %c0_3] : memref<8x4x4xf32, #tpu.memory_space<vmem>>, vector<8x4x4xf32>
    %2 = vector.extract_strided_slice %0 {offsets = [4, 0], sizes = [4, 16], strides = [1, 1]} : vector<40x16xf32> to vector<4x16xf32>
    %3 = vector.shape_cast %2 : vector<4x16xf32> to vector<1x4x16xf32>
    %4 = vector.shape_cast %3 : vector<1x4x16xf32> to vector<1x4x16xf32>
    %5 = vector.broadcast %4 : vector<1x4x16xf32> to vector<8x4x16xf32>
    %6 = vector.extract_strided_slice %1 {offsets = [0, 0, 0], sizes = [8, 4, 1], strides = [1, 1, 1]} : vector<8x4x4xf32> to vector<8x4x1xf32>
    %7 = vector.extract_strided_slice %0 {offsets = [0, 0], sizes = [1, 16], strides = [1, 1]} : vector<40x16xf32> to vector<1x16xf32>
    %8 = vector.shape_cast %7 : vector<1x16xf32> to vector<1x1x16xf32>
    %9 = vector.broadcast %6 : vector<8x4x1xf32> to vector<8x4x16xf32>
    %10 = vector.broadcast %8 : vector<1x1x16xf32> to vector<8x4x16xf32>
    %11 = arith.mulf %9, %10 : vector<8x4x16xf32>
    %12 = arith.addf %5, %11 : vector<8x4x16xf32>
    %13 = vector.extract_strided_slice %1 {offsets = [0, 0, 1], sizes = [8, 4, 1], strides = [1, 1, 1]} : vector<8x4x4xf32> to vector<8x4x1xf32>
    %14 = vector.extract_strided_slice %0 {offsets = [1, 0], sizes = [1, 16], strides = [1, 1]} : vector<40x16xf32> to vector<1x16xf32>
    %15 = vector.shape_cast %14 : vector<1x16xf32> to vector<1x1x16xf32>
    %16 = vector.broadcast %13 : vector<8x4x1xf32> to vector<8x4x16xf32>
    %17 = vector.broadcast %15 : vector<1x1x16xf32> to vector<8x4x16xf32>
    %18 = arith.mulf %16, %17 : vector<8x4x16xf32>
    %19 = arith.addf %12, %18 : vector<8x4x16xf32>
    %20 = vector.extract_strided_slice %1 {offsets = [0, 0, 2], sizes = [8, 4, 1], strides = [1, 1, 1]} : vector<8x4x4xf32> to vector<8x4x1xf32>
    %21 = vector.extract_strided_slice %0 {offsets = [2, 0], sizes = [1, 16], strides = [1, 1]} : vector<40x16xf32> to vector<1x16xf32>
    %22 = vector.shape_cast %21 : vector<1x16xf32> to vector<1x1x16xf32>
    %23 = vector.broadcast %20 : vector<8x4x1xf32> to vector<8x4x16xf32>
    %24 = vector.broadcast %22 : vector<1x1x16xf32> to vector<8x4x16xf32>
    %25 = arith.mulf %23, %24 : vector<8x4x16xf32>
    %26 = arith.addf %19, %25 : vector<8x4x16xf32>
    %27 = vector.extract_strided_slice %1 {offsets = [0, 0, 3], sizes = [8, 4, 1], strides = [1, 1, 1]} : vector<8x4x4xf32> to vector<8x4x1xf32>
    %28 = vector.extract_strided_slice %0 {offsets = [3, 0], sizes = [1, 16], strides = [1, 1]} : vector<40x16xf32> to vector<1x16xf32>
    %29 = vector.shape_cast %28 : vector<1x16xf32> to vector<1x1x16xf32>
    %30 = vector.broadcast %27 : vector<8x4x1xf32> to vector<8x4x16xf32>
    %31 = vector.broadcast %29 : vector<1x1x16xf32> to vector<8x4x16xf32>
    %32 = arith.mulf %30, %31 : vector<8x4x16xf32>
    %33 = arith.addf %26, %32 : vector<8x4x16xf32>
    %34 = vector.extract_strided_slice %0 {offsets = [8, 0], sizes = [4, 16], strides = [1, 1]} : vector<40x16xf32> to vector<4x16xf32>
    %35 = vector.extract_strided_slice %0 {offsets = [12, 0], sizes = [4, 16], strides = [1, 1]} : vector<40x16xf32> to vector<4x16xf32>
    %36 = vector.extract_strided_slice %0 {offsets = [16, 0], sizes = [4, 16], strides = [1, 1]} : vector<40x16xf32> to vector<4x16xf32>
    %37 = vector.extract_strided_slice %0 {offsets = [20, 0], sizes = [4, 16], strides = [1, 1]} : vector<40x16xf32> to vector<4x16xf32>
    %cst = arith.constant 0.000000e+00 : f32
    %38 = vector.broadcast %cst : f32 to vector<4x4xf32>
    %39 = vector.extract_strided_slice %33 {offsets = [0, 0, 0], sizes = [1, 4, 16], strides = [1, 1, 1]} : vector<8x4x16xf32> to vector<1x4x16xf32>
    %40 = vector.shape_cast %39 : vector<1x4x16xf32> to vector<4x16xf32>
    %41 = vector.extract_strided_slice %38 {offsets = [0, 0], sizes = [4, 1], strides = [1, 1]} : vector<4x4xf32> to vector<4x1xf32>
    %42 = vector.broadcast %41 : vector<4x1xf32> to vector<4x16xf32>
    %43 = arith.mulf %42, %34 : vector<4x16xf32>
    %44 = vector.extract_strided_slice %38 {offsets = [0, 1], sizes = [4, 1], strides = [1, 1]} : vector<4x4xf32> to vector<4x1xf32>
    %45 = vector.broadcast %44 : vector<4x1xf32> to vector<4x16xf32>
    %46 = arith.mulf %45, %35 : vector<4x16xf32>
    %47 = vector.extract_strided_slice %38 {offsets = [0, 2], sizes = [4, 1], strides = [1, 1]} : vector<4x4xf32> to vector<4x1xf32>
    %48 = vector.broadcast %47 : vector<4x1xf32> to vector<4x16xf32>
    %49 = arith.mulf %48, %36 : vector<4x16xf32>
    %50 = vector.extract_strided_slice %38 {offsets = [0, 3], sizes = [4, 1], strides = [1, 1]} : vector<4x4xf32> to vector<4x1xf32>
    %51 = vector.broadcast %50 : vector<4x1xf32> to vector<4x16xf32>
    %52 = arith.mulf %51, %37 : vector<4x16xf32>
    %53 = arith.addf %43, %46 : vector<4x16xf32>
    %54 = arith.addf %49, %52 : vector<4x16xf32>
    %55 = arith.addf %53, %54 : vector<4x16xf32>
    %56 = arith.addf %40, %55 : vector<4x16xf32>
    %57 = math.tanh %56 : vector<4x16xf32>
    %58 = vector.extract_strided_slice %57 {offsets = [0, 0], sizes = [4, 12], strides = [1, 1]} : vector<4x16xf32> to vector<4x12xf32>
    %cst_4 = arith.constant 5.000000e-01 : f32
    %59 = vector.broadcast %cst_4 : f32 to vector<4x12xf32>
    %60 = arith.mulf %59, %58 : vector<4x12xf32>
    %cst_5 = arith.constant 5.000000e-01 : f32
    %61 = vector.broadcast %cst_5 : f32 to vector<4x12xf32>
    %62 = arith.addf %60, %61 : vector<4x12xf32>
    %63 = vector.extract_strided_slice %62 {offsets = [0, 0], sizes = [4, 4], strides = [1, 1]} : vector<4x12xf32> to vector<4x4xf32>
    %64 = vector.extract_strided_slice %62 {offsets = [0, 4], sizes = [4, 4], strides = [1, 1]} : vector<4x12xf32> to vector<4x4xf32>
    %65 = vector.extract_strided_slice %62 {offsets = [0, 8], sizes = [4, 4], strides = [1, 1]} : vector<4x12xf32> to vector<4x4xf32>
    %66 = vector.extract_strided_slice %57 {offsets = [0, 12], sizes = [4, 4], strides = [1, 1]} : vector<4x16xf32> to vector<4x4xf32>
    %67 = arith.mulf %64, %38 : vector<4x4xf32>
    %68 = arith.mulf %63, %66 : vector<4x4xf32>
    %69 = arith.addf %67, %68 : vector<4x4xf32>
    %70 = math.tanh %69 : vector<4x4xf32>
    %71 = arith.mulf %65, %70 : vector<4x4xf32>
    %72 = vector.extract_strided_slice %33 {offsets = [1, 0, 0], sizes = [1, 4, 16], strides = [1, 1, 1]} : vector<8x4x16xf32> to vector<1x4x16xf32>
    %73 = vector.shape_cast %72 : vector<1x4x16xf32> to vector<4x16xf32>
    %74 = vector.extract_strided_slice %71 {offsets = [0, 0], sizes = [4, 1], strides = [1, 1]} : vector<4x4xf32> to vector<4x1xf32>
    %75 = vector.broadcast %74 : vector<4x1xf32> to vector<4x16xf32>
    %76 = arith.mulf %75, %34 : vector<4x16xf32>
    %77 = vector.extract_strided_slice %71 {offsets = [0, 1], sizes = [4, 1], strides = [1, 1]} : vector<4x4xf32> to vector<4x1xf32>
    %78 = vector.broadcast %77 : vector<4x1xf32> to vector<4x16xf32>
    %79 = arith.mulf %78, %35 : vector<4x16xf32>
    %80 = vector.extract_strided_slice %71 {offsets = [0, 2], sizes = [4, 1], strides = [1, 1]} : vector<4x4xf32> to vector<4x1xf32>
    %81 = vector.broadcast %80 : vector<4x1xf32> to vector<4x16xf32>
    %82 = arith.mulf %81, %36 : vector<4x16xf32>
    %83 = vector.extract_strided_slice %71 {offsets = [0, 3], sizes = [4, 1], strides = [1, 1]} : vector<4x4xf32> to vector<4x1xf32>
    %84 = vector.broadcast %83 : vector<4x1xf32> to vector<4x16xf32>
    %85 = arith.mulf %84, %37 : vector<4x16xf32>
    %86 = arith.addf %76, %79 : vector<4x16xf32>
    %87 = arith.addf %82, %85 : vector<4x16xf32>
    %88 = arith.addf %86, %87 : vector<4x16xf32>
    %89 = arith.addf %73, %88 : vector<4x16xf32>
    %90 = math.tanh %89 : vector<4x16xf32>
    %91 = vector.extract_strided_slice %90 {offsets = [0, 0], sizes = [4, 12], strides = [1, 1]} : vector<4x16xf32> to vector<4x12xf32>
    %cst_6 = arith.constant 5.000000e-01 : f32
    %92 = vector.broadcast %cst_6 : f32 to vector<4x12xf32>
    %93 = arith.mulf %92, %91 : vector<4x12xf32>
    %cst_7 = arith.constant 5.000000e-01 : f32
    %94 = vector.broadcast %cst_7 : f32 to vector<4x12xf32>
    %95 = arith.addf %93, %94 : vector<4x12xf32>
    %96 = vector.extract_strided_slice %95 {offsets = [0, 0], sizes = [4, 4], strides = [1, 1]} : vector<4x12xf32> to vector<4x4xf32>
    %97 = vector.extract_strided_slice %95 {offsets = [0, 4], sizes = [4, 4], strides = [1, 1]} : vector<4x12xf32> to vector<4x4xf32>
    %98 = vector.extract_strided_slice %95 {offsets = [0, 8], sizes = [4, 4], strides = [1, 1]} : vector<4x12xf32> to vector<4x4xf32>
    %99 = vector.extract_strided_slice %90 {offsets = [0, 12], sizes = [4, 4], strides = [1, 1]} : vector<4x16xf32> to vector<4x4xf32>
    %100 = arith.mulf %97, %69 : vector<4x4xf32>
    %101 = arith.mulf %96, %99 : vector<4x4xf32>
    %102 = arith.addf %100, %101 : vector<4x4xf32>
    %103 = math.tanh %102 : vector<4x4xf32>
    %104 = arith.mulf %98, %103 : vector<4x4xf32>
    %105 = vector.extract_strided_slice %33 {offsets = [2, 0, 0], sizes = [1, 4, 16], strides = [1, 1, 1]} : vector<8x4x16xf32> to vector<1x4x16xf32>
    %106 = vector.shape_cast %105 : vector<1x4x16xf32> to vector<4x16xf32>
    %107 = vector.extract_strided_slice %104 {offsets = [0, 0], sizes = [4, 1], strides = [1, 1]} : vector<4x4xf32> to vector<4x1xf32>
    %108 = vector.broadcast %107 : vector<4x1xf32> to vector<4x16xf32>
    %109 = arith.mulf %108, %34 : vector<4x16xf32>
    %110 = vector.extract_strided_slice %104 {offsets = [0, 1], sizes = [4, 1], strides = [1, 1]} : vector<4x4xf32> to vector<4x1xf32>
    %111 = vector.broadcast %110 : vector<4x1xf32> to vector<4x16xf32>
    %112 = arith.mulf %111, %35 : vector<4x16xf32>
    %113 = vector.extract_strided_slice %104 {offsets = [0, 2], sizes = [4, 1], strides = [1, 1]} : vector<4x4xf32> to vector<4x1xf32>
    %114 = vector.broadcast %113 : vector<4x1xf32> to vector<4x16xf32>
    %115 = arith.mulf %114, %36 : vector<4x16xf32>
    %116 = vector.extract_strided_slice %104 {offsets = [0, 3], sizes = [4, 1], strides = [1, 1]} : vector<4x4xf32> to vector<4x1xf32>
    %117 = vector.broadcast %116 : vector<4x1xf32> to vector<4x16xf32>
    %118 = arith.mulf %117, %37 : vector<4x16xf32>
    %119 = arith.addf %109, %112 : vector<4x16xf32>
    %120 = arith.addf %115, %118 : vector<4x16xf32>
    %121 = arith.addf %119, %120 : vector<4x16xf32>
    %122 = arith.addf %106, %121 : vector<4x16xf32>
    %123 = math.tanh %122 : vector<4x16xf32>
    %124 = vector.extract_strided_slice %123 {offsets = [0, 0], sizes = [4, 12], strides = [1, 1]} : vector<4x16xf32> to vector<4x12xf32>
    %cst_8 = arith.constant 5.000000e-01 : f32
    %125 = vector.broadcast %cst_8 : f32 to vector<4x12xf32>
    %126 = arith.mulf %125, %124 : vector<4x12xf32>
    %cst_9 = arith.constant 5.000000e-01 : f32
    %127 = vector.broadcast %cst_9 : f32 to vector<4x12xf32>
    %128 = arith.addf %126, %127 : vector<4x12xf32>
    %129 = vector.extract_strided_slice %128 {offsets = [0, 0], sizes = [4, 4], strides = [1, 1]} : vector<4x12xf32> to vector<4x4xf32>
    %130 = vector.extract_strided_slice %128 {offsets = [0, 4], sizes = [4, 4], strides = [1, 1]} : vector<4x12xf32> to vector<4x4xf32>
    %131 = vector.extract_strided_slice %128 {offsets = [0, 8], sizes = [4, 4], strides = [1, 1]} : vector<4x12xf32> to vector<4x4xf32>
    %132 = vector.extract_strided_slice %123 {offsets = [0, 12], sizes = [4, 4], strides = [1, 1]} : vector<4x16xf32> to vector<4x4xf32>
    %133 = arith.mulf %130, %102 : vector<4x4xf32>
    %134 = arith.mulf %129, %132 : vector<4x4xf32>
    %135 = arith.addf %133, %134 : vector<4x4xf32>
    %136 = math.tanh %135 : vector<4x4xf32>
    %137 = arith.mulf %131, %136 : vector<4x4xf32>
    %138 = vector.extract_strided_slice %33 {offsets = [3, 0, 0], sizes = [1, 4, 16], strides = [1, 1, 1]} : vector<8x4x16xf32> to vector<1x4x16xf32>
    %139 = vector.shape_cast %138 : vector<1x4x16xf32> to vector<4x16xf32>
    %140 = vector.extract_strided_slice %137 {offsets = [0, 0], sizes = [4, 1], strides = [1, 1]} : vector<4x4xf32> to vector<4x1xf32>
    %141 = vector.broadcast %140 : vector<4x1xf32> to vector<4x16xf32>
    %142 = arith.mulf %141, %34 : vector<4x16xf32>
    %143 = vector.extract_strided_slice %137 {offsets = [0, 1], sizes = [4, 1], strides = [1, 1]} : vector<4x4xf32> to vector<4x1xf32>
    %144 = vector.broadcast %143 : vector<4x1xf32> to vector<4x16xf32>
    %145 = arith.mulf %144, %35 : vector<4x16xf32>
    %146 = vector.extract_strided_slice %137 {offsets = [0, 2], sizes = [4, 1], strides = [1, 1]} : vector<4x4xf32> to vector<4x1xf32>
    %147 = vector.broadcast %146 : vector<4x1xf32> to vector<4x16xf32>
    %148 = arith.mulf %147, %36 : vector<4x16xf32>
    %149 = vector.extract_strided_slice %137 {offsets = [0, 3], sizes = [4, 1], strides = [1, 1]} : vector<4x4xf32> to vector<4x1xf32>
    %150 = vector.broadcast %149 : vector<4x1xf32> to vector<4x16xf32>
    %151 = arith.mulf %150, %37 : vector<4x16xf32>
    %152 = arith.addf %142, %145 : vector<4x16xf32>
    %153 = arith.addf %148, %151 : vector<4x16xf32>
    %154 = arith.addf %152, %153 : vector<4x16xf32>
    %155 = arith.addf %139, %154 : vector<4x16xf32>
    %156 = math.tanh %155 : vector<4x16xf32>
    %157 = vector.extract_strided_slice %156 {offsets = [0, 0], sizes = [4, 12], strides = [1, 1]} : vector<4x16xf32> to vector<4x12xf32>
    %cst_10 = arith.constant 5.000000e-01 : f32
    %158 = vector.broadcast %cst_10 : f32 to vector<4x12xf32>
    %159 = arith.mulf %158, %157 : vector<4x12xf32>
    %cst_11 = arith.constant 5.000000e-01 : f32
    %160 = vector.broadcast %cst_11 : f32 to vector<4x12xf32>
    %161 = arith.addf %159, %160 : vector<4x12xf32>
    %162 = vector.extract_strided_slice %161 {offsets = [0, 0], sizes = [4, 4], strides = [1, 1]} : vector<4x12xf32> to vector<4x4xf32>
    %163 = vector.extract_strided_slice %161 {offsets = [0, 4], sizes = [4, 4], strides = [1, 1]} : vector<4x12xf32> to vector<4x4xf32>
    %164 = vector.extract_strided_slice %161 {offsets = [0, 8], sizes = [4, 4], strides = [1, 1]} : vector<4x12xf32> to vector<4x4xf32>
    %165 = vector.extract_strided_slice %156 {offsets = [0, 12], sizes = [4, 4], strides = [1, 1]} : vector<4x16xf32> to vector<4x4xf32>
    %166 = arith.mulf %163, %135 : vector<4x4xf32>
    %167 = arith.mulf %162, %165 : vector<4x4xf32>
    %168 = arith.addf %166, %167 : vector<4x4xf32>
    %169 = math.tanh %168 : vector<4x4xf32>
    %170 = arith.mulf %164, %169 : vector<4x4xf32>
    %171 = vector.extract_strided_slice %33 {offsets = [4, 0, 0], sizes = [1, 4, 16], strides = [1, 1, 1]} : vector<8x4x16xf32> to vector<1x4x16xf32>
    %172 = vector.shape_cast %171 : vector<1x4x16xf32> to vector<4x16xf32>
    %173 = vector.extract_strided_slice %170 {offsets = [0, 0], sizes = [4, 1], strides = [1, 1]} : vector<4x4xf32> to vector<4x1xf32>
    %174 = vector.broadcast %173 : vector<4x1xf32> to vector<4x16xf32>
    %175 = arith.mulf %174, %34 : vector<4x16xf32>
    %176 = vector.extract_strided_slice %170 {offsets = [0, 1], sizes = [4, 1], strides = [1, 1]} : vector<4x4xf32> to vector<4x1xf32>
    %177 = vector.broadcast %176 : vector<4x1xf32> to vector<4x16xf32>
    %178 = arith.mulf %177, %35 : vector<4x16xf32>
    %179 = vector.extract_strided_slice %170 {offsets = [0, 2], sizes = [4, 1], strides = [1, 1]} : vector<4x4xf32> to vector<4x1xf32>
    %180 = vector.broadcast %179 : vector<4x1xf32> to vector<4x16xf32>
    %181 = arith.mulf %180, %36 : vector<4x16xf32>
    %182 = vector.extract_strided_slice %170 {offsets = [0, 3], sizes = [4, 1], strides = [1, 1]} : vector<4x4xf32> to vector<4x1xf32>
    %183 = vector.broadcast %182 : vector<4x1xf32> to vector<4x16xf32>
    %184 = arith.mulf %183, %37 : vector<4x16xf32>
    %185 = arith.addf %175, %178 : vector<4x16xf32>
    %186 = arith.addf %181, %184 : vector<4x16xf32>
    %187 = arith.addf %185, %186 : vector<4x16xf32>
    %188 = arith.addf %172, %187 : vector<4x16xf32>
    %189 = math.tanh %188 : vector<4x16xf32>
    %190 = vector.extract_strided_slice %189 {offsets = [0, 0], sizes = [4, 12], strides = [1, 1]} : vector<4x16xf32> to vector<4x12xf32>
    %cst_12 = arith.constant 5.000000e-01 : f32
    %191 = vector.broadcast %cst_12 : f32 to vector<4x12xf32>
    %192 = arith.mulf %191, %190 : vector<4x12xf32>
    %cst_13 = arith.constant 5.000000e-01 : f32
    %193 = vector.broadcast %cst_13 : f32 to vector<4x12xf32>
    %194 = arith.addf %192, %193 : vector<4x12xf32>
    %195 = vector.extract_strided_slice %194 {offsets = [0, 0], sizes = [4, 4], strides = [1, 1]} : vector<4x12xf32> to vector<4x4xf32>
    %196 = vector.extract_strided_slice %194 {offsets = [0, 4], sizes = [4, 4], strides = [1, 1]} : vector<4x12xf32> to vector<4x4xf32>
    %197 = vector.extract_strided_slice %194 {offsets = [0, 8], sizes = [4, 4], strides = [1, 1]} : vector<4x12xf32> to vector<4x4xf32>
    %198 = vector.extract_strided_slice %189 {offsets = [0, 12], sizes = [4, 4], strides = [1, 1]} : vector<4x16xf32> to vector<4x4xf32>
    %199 = arith.mulf %196, %168 : vector<4x4xf32>
    %200 = arith.mulf %195, %198 : vector<4x4xf32>
    %201 = arith.addf %199, %200 : vector<4x4xf32>
    %202 = math.tanh %201 : vector<4x4xf32>
    %203 = arith.mulf %197, %202 : vector<4x4xf32>
    %204 = vector.extract_strided_slice %33 {offsets = [5, 0, 0], sizes = [1, 4, 16], strides = [1, 1, 1]} : vector<8x4x16xf32> to vector<1x4x16xf32>
    %205 = vector.shape_cast %204 : vector<1x4x16xf32> to vector<4x16xf32>
    %206 = vector.extract_strided_slice %203 {offsets = [0, 0], sizes = [4, 1], strides = [1, 1]} : vector<4x4xf32> to vector<4x1xf32>
    %207 = vector.broadcast %206 : vector<4x1xf32> to vector<4x16xf32>
    %208 = arith.mulf %207, %34 : vector<4x16xf32>
    %209 = vector.extract_strided_slice %203 {offsets = [0, 1], sizes = [4, 1], strides = [1, 1]} : vector<4x4xf32> to vector<4x1xf32>
    %210 = vector.broadcast %209 : vector<4x1xf32> to vector<4x16xf32>
    %211 = arith.mulf %210, %35 : vector<4x16xf32>
    %212 = vector.extract_strided_slice %203 {offsets = [0, 2], sizes = [4, 1], strides = [1, 1]} : vector<4x4xf32> to vector<4x1xf32>
    %213 = vector.broadcast %212 : vector<4x1xf32> to vector<4x16xf32>
    %214 = arith.mulf %213, %36 : vector<4x16xf32>
    %215 = vector.extract_strided_slice %203 {offsets = [0, 3], sizes = [4, 1], strides = [1, 1]} : vector<4x4xf32> to vector<4x1xf32>
    %216 = vector.broadcast %215 : vector<4x1xf32> to vector<4x16xf32>
    %217 = arith.mulf %216, %37 : vector<4x16xf32>
    %218 = arith.addf %208, %211 : vector<4x16xf32>
    %219 = arith.addf %214, %217 : vector<4x16xf32>
    %220 = arith.addf %218, %219 : vector<4x16xf32>
    %221 = arith.addf %205, %220 : vector<4x16xf32>
    %222 = math.tanh %221 : vector<4x16xf32>
    %223 = vector.extract_strided_slice %222 {offsets = [0, 0], sizes = [4, 12], strides = [1, 1]} : vector<4x16xf32> to vector<4x12xf32>
    %cst_14 = arith.constant 5.000000e-01 : f32
    %224 = vector.broadcast %cst_14 : f32 to vector<4x12xf32>
    %225 = arith.mulf %224, %223 : vector<4x12xf32>
    %cst_15 = arith.constant 5.000000e-01 : f32
    %226 = vector.broadcast %cst_15 : f32 to vector<4x12xf32>
    %227 = arith.addf %225, %226 : vector<4x12xf32>
    %228 = vector.extract_strided_slice %227 {offsets = [0, 0], sizes = [4, 4], strides = [1, 1]} : vector<4x12xf32> to vector<4x4xf32>
    %229 = vector.extract_strided_slice %227 {offsets = [0, 4], sizes = [4, 4], strides = [1, 1]} : vector<4x12xf32> to vector<4x4xf32>
    %230 = vector.extract_strided_slice %227 {offsets = [0, 8], sizes = [4, 4], strides = [1, 1]} : vector<4x12xf32> to vector<4x4xf32>
    %231 = vector.extract_strided_slice %222 {offsets = [0, 12], sizes = [4, 4], strides = [1, 1]} : vector<4x16xf32> to vector<4x4xf32>
    %232 = arith.mulf %229, %201 : vector<4x4xf32>
    %233 = arith.mulf %228, %231 : vector<4x4xf32>
    %234 = arith.addf %232, %233 : vector<4x4xf32>
    %235 = math.tanh %234 : vector<4x4xf32>
    %236 = arith.mulf %230, %235 : vector<4x4xf32>
    %237 = vector.extract_strided_slice %33 {offsets = [6, 0, 0], sizes = [1, 4, 16], strides = [1, 1, 1]} : vector<8x4x16xf32> to vector<1x4x16xf32>
    %238 = vector.shape_cast %237 : vector<1x4x16xf32> to vector<4x16xf32>
    %239 = vector.extract_strided_slice %236 {offsets = [0, 0], sizes = [4, 1], strides = [1, 1]} : vector<4x4xf32> to vector<4x1xf32>
    %240 = vector.broadcast %239 : vector<4x1xf32> to vector<4x16xf32>
    %241 = arith.mulf %240, %34 : vector<4x16xf32>
    %242 = vector.extract_strided_slice %236 {offsets = [0, 1], sizes = [4, 1], strides = [1, 1]} : vector<4x4xf32> to vector<4x1xf32>
    %243 = vector.broadcast %242 : vector<4x1xf32> to vector<4x16xf32>
    %244 = arith.mulf %243, %35 : vector<4x16xf32>
    %245 = vector.extract_strided_slice %236 {offsets = [0, 2], sizes = [4, 1], strides = [1, 1]} : vector<4x4xf32> to vector<4x1xf32>
    %246 = vector.broadcast %245 : vector<4x1xf32> to vector<4x16xf32>
    %247 = arith.mulf %246, %36 : vector<4x16xf32>
    %248 = vector.extract_strided_slice %236 {offsets = [0, 3], sizes = [4, 1], strides = [1, 1]} : vector<4x4xf32> to vector<4x1xf32>
    %249 = vector.broadcast %248 : vector<4x1xf32> to vector<4x16xf32>
    %250 = arith.mulf %249, %37 : vector<4x16xf32>
    %251 = arith.addf %241, %244 : vector<4x16xf32>
    %252 = arith.addf %247, %250 : vector<4x16xf32>
    %253 = arith.addf %251, %252 : vector<4x16xf32>
    %254 = arith.addf %238, %253 : vector<4x16xf32>
    %255 = math.tanh %254 : vector<4x16xf32>
    %256 = vector.extract_strided_slice %255 {offsets = [0, 0], sizes = [4, 12], strides = [1, 1]} : vector<4x16xf32> to vector<4x12xf32>
    %cst_16 = arith.constant 5.000000e-01 : f32
    %257 = vector.broadcast %cst_16 : f32 to vector<4x12xf32>
    %258 = arith.mulf %257, %256 : vector<4x12xf32>
    %cst_17 = arith.constant 5.000000e-01 : f32
    %259 = vector.broadcast %cst_17 : f32 to vector<4x12xf32>
    %260 = arith.addf %258, %259 : vector<4x12xf32>
    %261 = vector.extract_strided_slice %260 {offsets = [0, 0], sizes = [4, 4], strides = [1, 1]} : vector<4x12xf32> to vector<4x4xf32>
    %262 = vector.extract_strided_slice %260 {offsets = [0, 4], sizes = [4, 4], strides = [1, 1]} : vector<4x12xf32> to vector<4x4xf32>
    %263 = vector.extract_strided_slice %260 {offsets = [0, 8], sizes = [4, 4], strides = [1, 1]} : vector<4x12xf32> to vector<4x4xf32>
    %264 = vector.extract_strided_slice %255 {offsets = [0, 12], sizes = [4, 4], strides = [1, 1]} : vector<4x16xf32> to vector<4x4xf32>
    %265 = arith.mulf %262, %234 : vector<4x4xf32>
    %266 = arith.mulf %261, %264 : vector<4x4xf32>
    %267 = arith.addf %265, %266 : vector<4x4xf32>
    %268 = math.tanh %267 : vector<4x4xf32>
    %269 = arith.mulf %263, %268 : vector<4x4xf32>
    %270 = vector.extract_strided_slice %33 {offsets = [7, 0, 0], sizes = [1, 4, 16], strides = [1, 1, 1]} : vector<8x4x16xf32> to vector<1x4x16xf32>
    %271 = vector.shape_cast %270 : vector<1x4x16xf32> to vector<4x16xf32>
    %272 = vector.extract_strided_slice %269 {offsets = [0, 0], sizes = [4, 1], strides = [1, 1]} : vector<4x4xf32> to vector<4x1xf32>
    %273 = vector.broadcast %272 : vector<4x1xf32> to vector<4x16xf32>
    %274 = arith.mulf %273, %34 : vector<4x16xf32>
    %275 = vector.extract_strided_slice %269 {offsets = [0, 1], sizes = [4, 1], strides = [1, 1]} : vector<4x4xf32> to vector<4x1xf32>
    %276 = vector.broadcast %275 : vector<4x1xf32> to vector<4x16xf32>
    %277 = arith.mulf %276, %35 : vector<4x16xf32>
    %278 = vector.extract_strided_slice %269 {offsets = [0, 2], sizes = [4, 1], strides = [1, 1]} : vector<4x4xf32> to vector<4x1xf32>
    %279 = vector.broadcast %278 : vector<4x1xf32> to vector<4x16xf32>
    %280 = arith.mulf %279, %36 : vector<4x16xf32>
    %281 = vector.extract_strided_slice %269 {offsets = [0, 3], sizes = [4, 1], strides = [1, 1]} : vector<4x4xf32> to vector<4x1xf32>
    %282 = vector.broadcast %281 : vector<4x1xf32> to vector<4x16xf32>
    %283 = arith.mulf %282, %37 : vector<4x16xf32>
    %284 = arith.addf %274, %277 : vector<4x16xf32>
    %285 = arith.addf %280, %283 : vector<4x16xf32>
    %286 = arith.addf %284, %285 : vector<4x16xf32>
    %287 = arith.addf %271, %286 : vector<4x16xf32>
    %288 = math.tanh %287 : vector<4x16xf32>
    %289 = vector.extract_strided_slice %288 {offsets = [0, 0], sizes = [4, 12], strides = [1, 1]} : vector<4x16xf32> to vector<4x12xf32>
    %cst_18 = arith.constant 5.000000e-01 : f32
    %290 = vector.broadcast %cst_18 : f32 to vector<4x12xf32>
    %291 = arith.mulf %290, %289 : vector<4x12xf32>
    %cst_19 = arith.constant 5.000000e-01 : f32
    %292 = vector.broadcast %cst_19 : f32 to vector<4x12xf32>
    %293 = arith.addf %291, %292 : vector<4x12xf32>
    %294 = vector.extract_strided_slice %293 {offsets = [0, 0], sizes = [4, 4], strides = [1, 1]} : vector<4x12xf32> to vector<4x4xf32>
    %295 = vector.extract_strided_slice %293 {offsets = [0, 4], sizes = [4, 4], strides = [1, 1]} : vector<4x12xf32> to vector<4x4xf32>
    %296 = vector.extract_strided_slice %293 {offsets = [0, 8], sizes = [4, 4], strides = [1, 1]} : vector<4x12xf32> to vector<4x4xf32>
    %297 = vector.extract_strided_slice %288 {offsets = [0, 12], sizes = [4, 4], strides = [1, 1]} : vector<4x16xf32> to vector<4x4xf32>
    %298 = arith.mulf %295, %267 : vector<4x4xf32>
    %299 = arith.mulf %294, %297 : vector<4x4xf32>
    %300 = arith.addf %298, %299 : vector<4x4xf32>
    %301 = math.tanh %300 : vector<4x4xf32>
    %302 = arith.mulf %296, %301 : vector<4x4xf32>
    %303 = vector.shape_cast %71 : vector<4x4xf32> to vector<4x1x4xf32>
    %304 = vector.shape_cast %104 : vector<4x4xf32> to vector<4x1x4xf32>
    %305 = vector.shape_cast %137 : vector<4x4xf32> to vector<4x1x4xf32>
    %306 = vector.shape_cast %170 : vector<4x4xf32> to vector<4x1x4xf32>
    %307 = vector.shape_cast %203 : vector<4x4xf32> to vector<4x1x4xf32>
    %308 = vector.shape_cast %236 : vector<4x4xf32> to vector<4x1x4xf32>
    %309 = vector.shape_cast %269 : vector<4x4xf32> to vector<4x1x4xf32>
    %310 = vector.shape_cast %302 : vector<4x4xf32> to vector<4x1x4xf32>
    %311 = tpu.concatenate %303, %304, %305, %306, %307, %308, %309, %310 in 1 : vector<4x1x4xf32>, vector<4x1x4xf32>, vector<4x1x4xf32>, vector<4x1x4xf32>, vector<4x1x4xf32>, vector<4x1x4xf32>, vector<4x1x4xf32>, vector<4x1x4xf32> -> vector<4x8x4xf32>
    %312 = vector.extract_strided_slice %311 {offsets = [0, 0, 0], sizes = [2, 8, 4], strides = [1, 1, 1]} : vector<4x8x4xf32> to vector<2x8x4xf32>
    %313 = vector.shape_cast %302 : vector<4x4xf32> to vector<4x1x4xf32>
    %314 = vector.shape_cast %269 : vector<4x4xf32> to vector<4x1x4xf32>
    %315 = vector.shape_cast %236 : vector<4x4xf32> to vector<4x1x4xf32>
    %316 = vector.shape_cast %203 : vector<4x4xf32> to vector<4x1x4xf32>
    %317 = vector.shape_cast %170 : vector<4x4xf32> to vector<4x1x4xf32>
    %318 = vector.shape_cast %137 : vector<4x4xf32> to vector<4x1x4xf32>
    %319 = vector.shape_cast %104 : vector<4x4xf32> to vector<4x1x4xf32>
    %320 = vector.shape_cast %71 : vector<4x4xf32> to vector<4x1x4xf32>
    %321 = tpu.concatenate %313, %314, %315, %316, %317, %318, %319, %320 in 1 : vector<4x1x4xf32>, vector<4x1x4xf32>, vector<4x1x4xf32>, vector<4x1x4xf32>, vector<4x1x4xf32>, vector<4x1x4xf32>, vector<4x1x4xf32>, vector<4x1x4xf32> -> vector<4x8x4xf32>
    %322 = vector.extract_strided_slice %321 {offsets = [2, 0, 0], sizes = [2, 8, 4], strides = [1, 1, 1]} : vector<4x8x4xf32> to vector<2x8x4xf32>
    %323 = vector.extract_strided_slice %0 {offsets = [24, 0], sizes = [8, 2], strides = [1, 1]} : vector<40x16xf32> to vector<8x2xf32>
    %324 = vector.extract_strided_slice %0 {offsets = [32, 0], sizes = [1, 2], strides = [1, 1]} : vector<40x16xf32> to vector<1x2xf32>
    %325 = vector.shape_cast %324 : vector<1x2xf32> to vector<1x1x2xf32>
    %326 = vector.shape_cast %325 : vector<1x1x2xf32> to vector<1x1x2xf32>
    %327 = vector.broadcast %326 : vector<1x1x2xf32> to vector<2x8x2xf32>
    %328 = vector.extract_strided_slice %312 {offsets = [0, 0, 0], sizes = [2, 8, 1], strides = [1, 1, 1]} : vector<2x8x4xf32> to vector<2x8x1xf32>
    %329 = vector.extract_strided_slice %323 {offsets = [0, 0], sizes = [1, 2], strides = [1, 1]} : vector<8x2xf32> to vector<1x2xf32>
    %330 = vector.shape_cast %329 : vector<1x2xf32> to vector<1x1x2xf32>
    %331 = vector.broadcast %328 : vector<2x8x1xf32> to vector<2x8x2xf32>
    %332 = vector.broadcast %330 : vector<1x1x2xf32> to vector<2x8x2xf32>
    %333 = arith.mulf %331, %332 : vector<2x8x2xf32>
    %334 = arith.addf %327, %333 : vector<2x8x2xf32>
    %335 = vector.extract_strided_slice %322 {offsets = [0, 0, 0], sizes = [2, 8, 1], strides = [1, 1, 1]} : vector<2x8x4xf32> to vector<2x8x1xf32>
    %336 = vector.extract_strided_slice %323 {offsets = [4, 0], sizes = [1, 2], strides = [1, 1]} : vector<8x2xf32> to vector<1x2xf32>
    %337 = vector.shape_cast %336 : vector<1x2xf32> to vector<1x1x2xf32>
    %338 = vector.broadcast %335 : vector<2x8x1xf32> to vector<2x8x2xf32>
    %339 = vector.broadcast %337 : vector<1x1x2xf32> to vector<2x8x2xf32>
    %340 = arith.mulf %338, %339 : vector<2x8x2xf32>
    %341 = arith.addf %334, %340 : vector<2x8x2xf32>
    %342 = vector.extract_strided_slice %312 {offsets = [0, 0, 1], sizes = [2, 8, 1], strides = [1, 1, 1]} : vector<2x8x4xf32> to vector<2x8x1xf32>
    %343 = vector.extract_strided_slice %323 {offsets = [1, 0], sizes = [1, 2], strides = [1, 1]} : vector<8x2xf32> to vector<1x2xf32>
    %344 = vector.shape_cast %343 : vector<1x2xf32> to vector<1x1x2xf32>
    %345 = vector.broadcast %342 : vector<2x8x1xf32> to vector<2x8x2xf32>
    %346 = vector.broadcast %344 : vector<1x1x2xf32> to vector<2x8x2xf32>
    %347 = arith.mulf %345, %346 : vector<2x8x2xf32>
    %348 = arith.addf %341, %347 : vector<2x8x2xf32>
    %349 = vector.extract_strided_slice %322 {offsets = [0, 0, 1], sizes = [2, 8, 1], strides = [1, 1, 1]} : vector<2x8x4xf32> to vector<2x8x1xf32>
    %350 = vector.extract_strided_slice %323 {offsets = [5, 0], sizes = [1, 2], strides = [1, 1]} : vector<8x2xf32> to vector<1x2xf32>
    %351 = vector.shape_cast %350 : vector<1x2xf32> to vector<1x1x2xf32>
    %352 = vector.broadcast %349 : vector<2x8x1xf32> to vector<2x8x2xf32>
    %353 = vector.broadcast %351 : vector<1x1x2xf32> to vector<2x8x2xf32>
    %354 = arith.mulf %352, %353 : vector<2x8x2xf32>
    %355 = arith.addf %348, %354 : vector<2x8x2xf32>
    %356 = vector.extract_strided_slice %312 {offsets = [0, 0, 2], sizes = [2, 8, 1], strides = [1, 1, 1]} : vector<2x8x4xf32> to vector<2x8x1xf32>
    %357 = vector.extract_strided_slice %323 {offsets = [2, 0], sizes = [1, 2], strides = [1, 1]} : vector<8x2xf32> to vector<1x2xf32>
    %358 = vector.shape_cast %357 : vector<1x2xf32> to vector<1x1x2xf32>
    %359 = vector.broadcast %356 : vector<2x8x1xf32> to vector<2x8x2xf32>
    %360 = vector.broadcast %358 : vector<1x1x2xf32> to vector<2x8x2xf32>
    %361 = arith.mulf %359, %360 : vector<2x8x2xf32>
    %362 = arith.addf %355, %361 : vector<2x8x2xf32>
    %363 = vector.extract_strided_slice %322 {offsets = [0, 0, 2], sizes = [2, 8, 1], strides = [1, 1, 1]} : vector<2x8x4xf32> to vector<2x8x1xf32>
    %364 = vector.extract_strided_slice %323 {offsets = [6, 0], sizes = [1, 2], strides = [1, 1]} : vector<8x2xf32> to vector<1x2xf32>
    %365 = vector.shape_cast %364 : vector<1x2xf32> to vector<1x1x2xf32>
    %366 = vector.broadcast %363 : vector<2x8x1xf32> to vector<2x8x2xf32>
    %367 = vector.broadcast %365 : vector<1x1x2xf32> to vector<2x8x2xf32>
    %368 = arith.mulf %366, %367 : vector<2x8x2xf32>
    %369 = arith.addf %362, %368 : vector<2x8x2xf32>
    %370 = vector.extract_strided_slice %312 {offsets = [0, 0, 3], sizes = [2, 8, 1], strides = [1, 1, 1]} : vector<2x8x4xf32> to vector<2x8x1xf32>
    %371 = vector.extract_strided_slice %323 {offsets = [3, 0], sizes = [1, 2], strides = [1, 1]} : vector<8x2xf32> to vector<1x2xf32>
    %372 = vector.shape_cast %371 : vector<1x2xf32> to vector<1x1x2xf32>
    %373 = vector.broadcast %370 : vector<2x8x1xf32> to vector<2x8x2xf32>
    %374 = vector.broadcast %372 : vector<1x1x2xf32> to vector<2x8x2xf32>
    %375 = arith.mulf %373, %374 : vector<2x8x2xf32>
    %376 = arith.addf %369, %375 : vector<2x8x2xf32>
    %377 = vector.extract_strided_slice %322 {offsets = [0, 0, 3], sizes = [2, 8, 1], strides = [1, 1, 1]} : vector<2x8x4xf32> to vector<2x8x1xf32>
    %378 = vector.extract_strided_slice %323 {offsets = [7, 0], sizes = [1, 2], strides = [1, 1]} : vector<8x2xf32> to vector<1x2xf32>
    %379 = vector.shape_cast %378 : vector<1x2xf32> to vector<1x1x2xf32>
    %380 = vector.broadcast %377 : vector<2x8x1xf32> to vector<2x8x2xf32>
    %381 = vector.broadcast %379 : vector<1x1x2xf32> to vector<2x8x2xf32>
    %382 = arith.mulf %380, %381 : vector<2x8x2xf32>
    %383 = arith.addf %376, %382 : vector<2x8x2xf32>
    %384 = arith.negf %383 : vector<2x8x2xf32>
    %385 = math.exp %384 : vector<2x8x2xf32>
    %cst_20 = arith.constant 1.000000e+00 : f32
    %386 = vector.broadcast %cst_20 : f32 to vector<2x8x2xf32>
    %387 = arith.addf %386, %385 : vector<2x8x2xf32>
    %388 = arith.divf %386, %387 : vector<2x8x2xf32>
    %c0_21 = arith.constant 0 : index
    %c0_22 = arith.constant 0 : index
    %c0_23 = arith.constant 0 : index
    %389 = vector.load %arg2[%c0_21, %c0_22, %c0_23] : memref<2x8x2xf32, #tpu.memory_space<vmem>>, vector<2x8x2xf32>
    tpu.vector_store %arg2[%c0_21, %c0_22, %c0_23], %388 {strides = array<i32>} : memref<2x8x2xf32, #tpu.memory_space<vmem>>, vector<2x8x2xf32>,
    return
  }
}

</mosaic_0001>

<bundles_post_ra>
// kernel: rnn_forward.1
= control target key start
LH: loop header
LB: loop body
LE: loop exit
PB: predicated region body
PF: predicated region fallthrough
CT: control target
= control target key end

     0   :  { %v1358_v0 = vmov 0   ;;  %v1359_v2 = vmov 2   ;;  %v1360_v3 = vmov 1   ;;  %v1361_v4 = vmov 3   ;;  %s1362_s17 = smov 116   ;;  %s1363_s18 = smov 4   ;;  %s1880_s0 = inlined_call_operand.vmem [shape: f32[8,4,4], index: 0, kind: input, shape index: {}]   ;;  %s1881_s1 = inlined_call_operand.vmem [shape: f32[40,16], index: 1, kind: input, shape index: {}]   ;;  %s1882_s2 = inlined_call_operand.vmem [shape: f32[2,8,2], index: 2, kind: output, shape index: {}]  }
   0x1   :  { %1240 = vset.pattern.permute.xlu0 %v1358_v0  ;;  %v16_v1 = vld [vmem:[%s1880_s0] sm:$0xf]  ;;  %1242 = vset.pattern.permute.xlu1 %v1359_v2  ;;  %v64_v5 = vlaneseq  ;;  %v1401_v8 = vld [vmem:[%s1881_s1 + $0x8] sm:$0xff]  ;;  %v1406_v9 = vld [vmem:[%s1881_s1 + $0x10] sm:$0xff]  ;;  %v1364_v52 = vmov 10   ;;  %v1365_v54 = vmov 8  }
   0x2   :  { %26 = vperm.xlu0 %1240, %v16_v1   ;;  %185 = vperm.xlu1 %1242, %v16_v1   ;;  %v1411_v10 = vld [vmem:[%s1881_s1] sm:$0xff]  ;;  %v336_v11 = vmul.f32 0.0, %v1401_v8  ;;  %v337_v12 = vmul.f32 0.0, %v1406_v9  ;;  %v1366_v57 = vmov 9   ;;  %v1367_v58 = vmov 11  }
   0x3   :  { %v1393_v6 = vshrl.u32 %v64_v5, 7  ;;  %v17_v48 = vld [vmem:[%s1880_s0 + $0x4] sm:$0xf]  ;;  %vm967_vm0 = vcmask 1040384   ;;  %vm970_vm1 = vcmask 1041408   ;;  %vm973_vm2 = vcmask 1042432  }
   0x4   :  { %v339_v19 = vrot.slane %v336_v11, 4  ;;  %v343_v20 = vrot.slane %v337_v12, 4  ;;  %vm976_vm3 = vcmask 1043456   ;;  %vm979_vm4 = vcmask 1044480  }
   0x5   :  { %v1396_v7 = vsub.s32 0, %v1393_v6  ;;  %v218_v14 = vsub.s32 2, %v1393_v6  ;;  %v142_v15 = vsub.s32 1, %v1393_v6  ;;  %v294_v16 = vsub.s32 3, %v1393_v6 }
   0x6   :  { %1241 = vset.pattern.permute.xlu0 %v1360_v3  ;;  %1243 = vset.pattern.permute.xlu1 %v1361_v4  ;;  %v341_v26 = vadd.f32 %v339_v19, %v336_v11  ;;  %v345_v27 = vadd.f32 %v343_v20, %v337_v12  ;;  %vm982_vm5 = vcmask 1045504   ;;  %vm985_vm6 = vcmask 1046528  }
   0x7   :  { %109 = vperm.xlu0 %1241, %v16_v1   ;;  %261 = vperm.xlu1 %1243, %v16_v1   ;;  %v1417_v13 = vrot.slane %v1411_v10, %v1396_v7  ;;  %v1426_v22 = vrot.slane %v1411_v10, %v218_v14  ;;  %v1431_v23 = vrot.slane %v1411_v10, %v142_v15  ;;  %vm1220_vm7 = vcmask 15360  }
   0x8   :  { %v1436_v24 = vrot.slane %v1411_v10, %v294_v16  ;;  %v346_v35 = vadd.f32 %v345_v27, %v341_v26  ;;  %v1471_v26 = vrot.slane %v1406_v9, 4  ;;  %v1474_v27 = vrot.slane %v1401_v8, 4 }
   0xa   :  { %v348_v40 = vrot.slane %v346_v35, 4 }
   0xb   :  { %1245 = vset.pattern.permute.xlu1 %v1360_v3  ;;  %1244 = vset.pattern.permute.xlu0 %v1358_v0 }
  0x7d   :  { %v27_v17 = vpop.permute.xlu0 %26  ;;  %v186_v18 = vpop.permute.xlu1 %185 }
  0x7e   :  { %v68_v21 = vmul.f32 %v1417_v13, %v27_v17  ;;  %v220_v30 = vmul.f32 %v1426_v22, %v186_v18 }
  0x80   :  { %v84_v25 = vrot.slane %v68_v21, 4  ;;  %v236_v36 = vrot.slane %v220_v30, 4 }
  0x82   :  { %v110_v28 = vpop.permute.xlu0 %109  ;;  %v262_v29 = vpop.permute.xlu1 %261  ;;  %v100_v33 = vadd.f32 %v84_v25, %v1411_v10 }
  0x83   :  { %v144_v31 = vmul.f32 %v1431_v23, %v110_v28  ;;  %v296_v32 = vmul.f32 %v1436_v24, %v262_v29 }
  0x85   :  { %v160_v34 = vrot.slane %v144_v31, 4  ;;  %v312_v38 = vrot.slane %v296_v32, 4 }
  0x87   :  { %v176_v37 = vadd.f32 %v160_v34, %v100_v33 }
  0x89   :  { %v252_v39 = vadd.f32 %v236_v36, %v176_v37 }
  0x8b   :  { %v328_v41 = vadd.f32 %v312_v38, %v252_v39 }
  0x8d   :  { %v350_v42 = vadd.f32 %v348_v40, %v328_v41 }
  0x8f   :  { %1315 = vtanh.f32 %v350_v42 }
  0x9c   :  { %v1316_v43 = vpop.eup %1315 }
  0x9d   :  { %356 = vrot.lane.b32.xlu1 %v1316_v43, %s1362_s17  ;;  %v352_v44 = vmul.f32 0.5, %v1316_v43 }
  0x9f   :  { %v353_v45 = vadd.f32 0.5, %v352_v44 }
  0xa1   :  { %v354_v49 = vmul.f32 0.0, %v353_v45 }
 0x10f   :  { %v357_v46 = vpop.permute.xlu1 %356 }
 0x110   :  { %v359_v47 = vmul.f32 %v357_v46, %v353_v45  ;;  %v18_v46 = vld [vmem:[%s1880_s0 + $0x8] sm:$0xf] }
 0x112   :  { %361 = vrot.lane.b32.xlu0 %v359_v47, %s1363_s18 }
 0x116   :  { %31 = vperm.xlu0 %1244, %v17_v48  }
 0x11a   :  { %1247 = vset.pattern.permute.xlu0 %v1361_v4 }
 0x11b   :  { %265 = vperm.xlu0 %1247, %v17_v48  }
 0x11f   :  { %1250 = vset.pattern.permute.xlu0 %v1364_v52 }
 0x184   :  { %v362_v50 = vpop.permute.xlu0 %361 }
 0x185   :  { %v1448_v51 = vadd.f32 %v362_v50, %v354_v49 }
 0x187   :  { %1317 = vtanh.f32 %v1448_v51 }
 0x191   :  { %v32_v60 = vpop.permute.xlu0 %31 }
 0x192   :  { %v69_v61 = vmul.f32 %v1417_v13, %v32_v60 }
 0x194   :  { %v1318_v53 = vpop.eup %1317  ;;  %v85_v63 = vrot.slane %v69_v61, 4 }
 0x195   :  { %367 = vrot.lane.b32.xlu1 %v1318_v53, %s1363_s18  ;;  %v1368_v53 = vmov 1966171168  }
 0x196   :  { %v101_v11 = vadd.f32 %v85_v63, %v1411_v10  ;;  %v266_v18 = vpop.permute.xlu0 %265 }
 0x197   :  { %v297_v20 = vmul.f32 %v1436_v24, %v266_v18 }
 0x199   :  { %113 = vperm.xlu1 %1245, %v17_v48   ;;  %v313_v30 = vrot.slane %v297_v20, 4 }
 0x19d   :  { %1246 = vset.pattern.permute.xlu1 %v1359_v2 }
 0x19e   :  { %189 = vperm.xlu1 %1246, %v17_v48  }
 0x1a2   :  { %1248 = vset.pattern.permute.xlu1 %v1365_v54 }
 0x207   :  { %v368_v55 = vpop.permute.xlu1 %367 }
 0x208   :  { %v1455_v56 = vmul.f32 %v368_v55, %v353_v45  ;;  %v694_v55 = vunpack.c.l.s4 %v1368_v53 }
 0x20a   :  { %386 = vperm.xlu0 %1250, %v1455_v56   ;;  %373 = vperm.xlu1 %1248, %v1455_v56  }
 0x20e   :  { %1249 = vset.pattern.permute.xlu1 %v1366_v57  ;;  %1252 = vset.pattern.permute.xlu0 %v1358_v0 }
 0x20f   :  { %381 = vperm.xlu1 %1249, %v1455_v56  }
 0x213   :  { %1251 = vset.pattern.permute.xlu1 %v1367_v58 }
 0x214   :  { %394 = vperm.xlu1 %1251, %v1455_v56   ;;  %v114_v59 = vpop.permute.xlu1 %113 }
 0x215   :  { %v145_v1 = vmul.f32 %v1431_v23, %v114_v59  ;;  %v695_v59 = vunpack.c.0.s8 %v694_v55 }
 0x217   :  { %v161_v12 = vrot.slane %v145_v1, 4  ;;  %v1495_v60 = vsub.s32 %v695_v59, %v1393_v6 }
 0x218   :  { %1253 = vset.pattern.permute.xlu1 %v1360_v3 }
 0x219   :  { %v190_v62 = vpop.permute.xlu1 %189  ;;  %v177_v21 = vadd.f32 %v161_v12, %v101_v11 }
 0x21a   :  { %v221_v17 = vmul.f32 %v1426_v22, %v190_v62 }
 0x21c   :  { %v237_v25 = vrot.slane %v221_v17, 4 }
 0x21e   :  { %v253_v32 = vadd.f32 %v237_v25, %v177_v21 }
 0x220   :  { %v329_v38 = vadd.f32 %v313_v30, %v253_v32 }
 0x285   :  { %v374_v5 = vpop.permute.xlu1 %373  ;;  %v387_v28 = vpop.permute.xlu0 %386 }
 0x286   :  { %v392_v33 = vmul.f32 %v1471_v26, %v387_v28  ;;  %v379_v34 = vmul.f32 %v1474_v27, %v374_v5 }
 0x28a   :  { %v382_v19 = vpop.permute.xlu1 %381 }
 0x28b   :  { %v384_v29 = vmul.f32 %v382_v19, %v1401_v8 }
 0x28d   :  { %v398_v36 = vadd.f32 %v384_v29, %v379_v34 }
 0x28f   :  { %v395_v31 = vpop.permute.xlu1 %394 }
 0x290   :  { %v397_v35 = vmul.f32 %v395_v31, %v1406_v9 }
 0x292   :  { %v399_v37 = vadd.f32 %v397_v35, %v392_v33 }
 0x294   :  { %v400_v39 = vadd.f32 %v399_v37, %v398_v36 }
 0x296   :  { %v401_v40 = vadd.f32 %v400_v39, %v329_v38 }
 0x298   :  { %1319 = vtanh.f32 %v401_v40 }
 0x2a5   :  { %v1320_v41 = vpop.eup %1319 }
 0x2a6   :  { %407 = vrot.lane.b32.xlu1 %v1320_v41, %s1362_s17  ;;  %v403_v42 = vmul.f32 0.5, %v1320_v41 }
 0x2a8   :  { %v404_v43 = vadd.f32 0.5, %v403_v42 }
 0x2aa   :  { %v405_v47 = vmul.f32 %v404_v43, %v1448_v51  ;;  %v692_v51 = vcombine.high %v1455_v56, %v1455_v56 }
 0x2ac   :  { %v699_v63 = vrot.slane %v692_v51, %v1495_v60 }
 0x2ae   :  { %v700_v11 = vcombine.high %v699_v63, %v699_v63  ;;  %v1507_v56 = vrot.slane %v699_v63, %v1495_v60 }
 0x2b0   :  { %v1515_v20 = vrot.slane %v700_v11, %v1495_v60 }
 0x318   :  { %v408_v44 = vpop.permute.xlu1 %407 }
 0x319   :  { %v410_v45 = vmul.f32 %v408_v44, %v404_v43 }
 0x31b   :  { %412 = vrot.lane.b32.xlu0 %v410_v45, %s1363_s18 }
 0x31f   :  { %36 = vperm.xlu0 %1252, %v18_v46  }
 0x323   :  { %1255 = vset.pattern.permute.xlu0 %v1361_v4 }
 0x324   :  { %269 = vperm.xlu0 %1255, %v18_v46  }
 0x328   :  { %1258 = vset.pattern.permute.xlu0 %v1364_v52 }
 0x38d   :  { %v413_v48 = vpop.permute.xlu0 %412 }
 0x38e   :  { %v1488_v49 = vadd.f32 %v413_v48, %v405_v47 }
 0x390   :  { %1321 = vtanh.f32 %v1488_v49 }
 0x39a   :  { %v37_v30 = vpop.permute.xlu0 %36 }
 0x39b   :  { %v70_v31 = vmul.f32 %v1417_v13, %v37_v30 }
 0x39d   :  { %v1322_v50 = vpop.eup %1321  ;;  %v86_v33 = vrot.slane %v70_v31, 4 }
 0x39e   :  { %418 = vrot.lane.b32.xlu1 %v1322_v50, %s1363_s18 }
 0x39f   :  { %v102_v36 = vadd.f32 %v86_v33, %v1411_v10  ;;  %v270_v39 = vpop.permute.xlu0 %269 }
 0x3a0   :  { %v298_v41 = vmul.f32 %v1436_v24, %v270_v39 }
 0x3a2   :  { %117 = vperm.xlu1 %1253, %v18_v46  }
 0x3a6   :  { %1254 = vset.pattern.permute.xlu1 %v1359_v2 }
 0x3a7   :  { %193 = vperm.xlu1 %1254, %v18_v46   ;;  %v314_v46 = vrot.slane %v298_v41, 4 }
 0x3ab   :  { %1256 = vset.pattern.permute.xlu1 %v1365_v54 }
 0x410   :  { %v419_v61 = vpop.permute.xlu1 %418 }
 0x411   :  { %v421_v62 = vmul.f32 %v419_v61, %v404_v43 }
 0x413   :  { %v719_v1 = vcombine.high %v421_v62, %v421_v62  ;;  %434 = vperm.xlu0 %1258, %v421_v62   ;;  %424 = vperm.xlu1 %1256, %v421_v62  }
 0x415   :  { %v726_v5 = vrot.slane %v719_v1, %v1495_v60 }
 0x417   :  { %v727_v12 = vcombine.high %v726_v5, %v726_v5  ;;  %v1502_v17 = vrot.slane %v726_v5, %v1495_v60  ;;  %1257 = vset.pattern.permute.xlu1 %v1366_v57  ;;  %1260 = vset.pattern.permute.xlu0 %v1358_v0 }
 0x418   :  { %429 = vperm.xlu1 %1257, %v421_v62  }
 0x419   :  { %v1510_v18 = vrot.slane %v727_v12, %v1495_v60  ;;  %v900_v19 = vrot.slane %v1502_v17, %v1396_v7 }
 0x41b   :  { %v1519_v21 = vsel %vm967_vm0, %v1507_v56, %v900_v19  ;;  %v904_v25 = vrot.slane %v1510_v18, %v1396_v7 }
 0x41c   :  { %1259 = vset.pattern.permute.xlu1 %v1367_v58 }
 0x41d   :  { %439 = vperm.xlu1 %1259, %v421_v62   ;;  %v1526_v28 = vsel %vm967_vm0, %v1515_v20, %v904_v25  ;;  %v118_v29 = vpop.permute.xlu1 %117  ;;  %v19_v25 = vld [vmem:[%s1880_s0 + $0xc] sm:$0xf] }
 0x41e   :  { %v146_v34 = vmul.f32 %v1431_v23, %v118_v29 }
 0x420   :  { %v162_v37 = vrot.slane %v146_v34, 4 }
 0x421   :  { %1261 = vset.pattern.permute.xlu1 %v1360_v3 }
 0x422   :  { %v194_v32 = vpop.permute.xlu1 %193  ;;  %v178_v42 = vadd.f32 %v162_v37, %v102_v36 }
 0x423   :  { %v222_v38 = vmul.f32 %v1426_v22, %v194_v32 }
 0x425   :  { %v238_v43 = vrot.slane %v222_v38, 4 }
 0x427   :  { %v254_v48 = vadd.f32 %v238_v43, %v178_v42 }
 0x429   :  { %v330_v61 = vadd.f32 %v314_v46, %v254_v48 }
 0x48e   :  { %v425_v35 = vpop.permute.xlu1 %424  ;;  %v435_v44 = vpop.permute.xlu0 %434 }
 0x48f   :  { %v437_v50 = vmul.f32 %v435_v44, %v1471_v26  ;;  %v427_v53 = vmul.f32 %v425_v35, %v1474_v27 }
 0x493   :  { %v430_v40 = vpop.permute.xlu1 %429 }
 0x494   :  { %v432_v45 = vmul.f32 %v430_v40, %v1401_v8 }
 0x496   :  { %v443_v59 = vadd.f32 %v432_v45, %v427_v53 }
 0x498   :  { %v440_v47 = vpop.permute.xlu1 %439 }
 0x499   :  { %v442_v55 = vmul.f32 %v440_v47, %v1406_v9 }
 0x49b   :  { %v444_v51 = vadd.f32 %v442_v55, %v437_v50 }
 0x49d   :  { %v445_v62 = vadd.f32 %v444_v51, %v443_v59 }
 0x49f   :  { %v446_v63 = vadd.f32 %v445_v62, %v330_v61 }
 0x4a1   :  { %1323 = vtanh.f32 %v446_v63 }
 0x4ae   :  { %v1324_v1 = vpop.eup %1323 }
 0x4af   :  { %452 = vrot.lane.b32.xlu1 %v1324_v1, %s1362_s17  ;;  %v448_v5 = vmul.f32 0.5, %v1324_v1 }
 0x4b1   :  { %v449_v11 = vadd.f32 0.5, %v448_v5 }
 0x4b3   :  { %v450_v29 = vmul.f32 %v449_v11, %v1488_v49 }
 0x521   :  { %v453_v12 = vpop.permute.xlu1 %452 }
 0x522   :  { %v455_v19 = vmul.f32 %v453_v12, %v449_v11 }
 0x524   :  { %457 = vrot.lane.b32.xlu0 %v455_v19, %s1363_s18 }
 0x528   :  { %41 = vperm.xlu0 %1260, %v19_v25  }
 0x52c   :  { %1263 = vset.pattern.permute.xlu0 %v1361_v4 }
 0x52d   :  { %273 = vperm.xlu0 %1263, %v19_v25  }
 0x531   :  { %1266 = vset.pattern.permute.xlu0 %v1364_v52 }
 0x596   :  { %v458_v30 = vpop.permute.xlu0 %457 }
 0x597   :  { %v1546_v31 = vadd.f32 %v458_v30, %v450_v29 }
 0x599   :  { %1325 = vtanh.f32 %v1546_v31 }
 0x5a3   :  { %v42_v44 = vpop.permute.xlu0 %41 }
 0x5a4   :  { %v71_v45 = vmul.f32 %v1417_v13, %v42_v44  ;;  %v20_v44 = vld [vmem:[%s1880_s0 + $0x10] sm:$0xf] }
 0x5a6   :  { %v1326_v32 = vpop.eup %1325  ;;  %v87_v47 = vrot.slane %v71_v45, 4 }
 0x5a7   :  { %463 = vrot.lane.b32.xlu1 %v1326_v32, %s1363_s18 }
 0x5a8   :  { %v103_v50 = vadd.f32 %v87_v47, %v1411_v10  ;;  %v274_v59 = vpop.permute.xlu0 %273 }
 0x5ab   :  { %121 = vperm.xlu1 %1261, %v19_v25  }
 0x5af   :  { %1262 = vset.pattern.permute.xlu1 %v1359_v2 }
 0x5b0   :  { %197 = vperm.xlu1 %1262, %v19_v25  }
 0x5b4   :  { %1264 = vset.pattern.permute.xlu1 %v1365_v54 }
 0x619   :  { %v464_v33 = vpop.permute.xlu1 %463 }
 0x61a   :  { %v466_v34 = vmul.f32 %v464_v33, %v449_v11 }
 0x61c   :  { %v744_v35 = vcombine.high %v466_v34, %v466_v34  ;;  %479 = vperm.xlu0 %1266, %v466_v34   ;;  %469 = vperm.xlu1 %1264, %v466_v34  }
 0x61e   :  { %v751_v49 = vrot.slane %v744_v35, %v1495_v60 }
 0x620   :  { %v752_v36 = vcombine.high %v751_v49, %v751_v49  ;;  %v1554_v37 = vrot.slane %v751_v49, %v1495_v60  ;;  %1265 = vset.pattern.permute.xlu1 %v1366_v57  ;;  %1268 = vset.pattern.permute.xlu0 %v1358_v0 }
 0x621   :  { %474 = vperm.xlu1 %1265, %v466_v34  }
 0x622   :  { %v1559_v38 = vrot.slane %v752_v36, %v1495_v60  ;;  %v910_v39 = vrot.slane %v1554_v37, %v1396_v7 }
 0x624   :  { %v1565_v40 = vsel %vm970_vm1, %v1519_v21, %v910_v39  ;;  %v914_v41 = vrot.slane %v1559_v38, %v1396_v7 }
 0x625   :  { %1267 = vset.pattern.permute.xlu1 %v1367_v58 }
 0x626   :  { %484 = vperm.xlu1 %1267, %v466_v34   ;;  %v1572_v42 = vsel %vm970_vm1, %v1526_v28, %v914_v41  ;;  %v122_v43 = vpop.permute.xlu1 %121  ;;  %v299_v28 = vmul.f32 %v1436_v24, %v274_v59 }
 0x627   :  { %v147_v21 = vmul.f32 %v1431_v23, %v122_v43 }
 0x628   :  { %v315_v5 = vrot.slane %v299_v28, 4 }
 0x629   :  { %v163_v53 = vrot.slane %v147_v21, 4 }
 0x62a   :  { %1269 = vset.pattern.permute.xlu1 %v1360_v3 }
 0x62b   :  { %v198_v46 = vpop.permute.xlu1 %197  ;;  %v179_v61 = vadd.f32 %v163_v53, %v103_v50 }
 0x62c   :  { %v223_v55 = vmul.f32 %v1426_v22, %v198_v46 }
 0x62e   :  { %v239_v62 = vrot.slane %v223_v55, 4 }
 0x630   :  { %v255_v12 = vadd.f32 %v239_v62, %v179_v61 }
 0x632   :  { %v331_v33 = vadd.f32 %v315_v5, %v255_v12 }
 0x697   :  { %v470_v48 = vpop.permute.xlu1 %469  ;;  %v480_v63 = vpop.permute.xlu0 %479 }
 0x698   :  { %v482_v19 = vmul.f32 %v480_v63, %v1471_v26  ;;  %v472_v25 = vmul.f32 %v470_v48, %v1474_v27 }
 0x69c   :  { %v475_v51 = vpop.permute.xlu1 %474 }
 0x69d   :  { %v477_v1 = vmul.f32 %v475_v51, %v1401_v8 }
 0x69f   :  { %v488_v30 = vadd.f32 %v477_v1, %v472_v25 }
 0x6a1   :  { %v485_v11 = vpop.permute.xlu1 %484 }
 0x6a2   :  { %v487_v29 = vmul.f32 %v485_v11, %v1406_v9 }
 0x6a4   :  { %v489_v32 = vadd.f32 %v487_v29, %v482_v19 }
 0x6a6   :  { %v490_v34 = vadd.f32 %v489_v32, %v488_v30 }
 0x6a8   :  { %v491_v35 = vadd.f32 %v490_v34, %v331_v33 }
 0x6aa   :  { %1327 = vtanh.f32 %v491_v35 }
 0x6b7   :  { %v1328_v49 = vpop.eup %1327 }
 0x6b8   :  { %497 = vrot.lane.b32.xlu1 %v1328_v49, %s1362_s17  ;;  %v493_v36 = vmul.f32 0.5, %v1328_v49 }
 0x6ba   :  { %v494_v39 = vadd.f32 0.5, %v493_v36 }
 0x6bc   :  { %v495_v45 = vmul.f32 %v494_v39, %v1546_v31 }
 0x72a   :  { %v498_v41 = vpop.permute.xlu1 %497 }
 0x72b   :  { %v500_v43 = vmul.f32 %v498_v41, %v494_v39 }
 0x72d   :  { %502 = vrot.lane.b32.xlu0 %v500_v43, %s1363_s18 }
 0x731   :  { %46 = vperm.xlu0 %1268, %v20_v44  }
 0x735   :  { %1271 = vset.pattern.permute.xlu0 %v1361_v4 }
 0x736   :  { %277 = vperm.xlu0 %1271, %v20_v44  }
 0x73a   :  { %1274 = vset.pattern.permute.xlu0 %v1364_v52 }
 0x79f   :  { %v503_v46 = vpop.permute.xlu0 %502 }
 0x7a0   :  { %v1592_v47 = vadd.f32 %v503_v46, %v495_v45 }
 0x7a2   :  { %1329 = vtanh.f32 %v1592_v47 }
 0x7ac   :  { %v47_v5 = vpop.permute.xlu0 %46 }
 0x7ad   :  { %v72_v11 = vmul.f32 %v1417_v13, %v47_v5 }
 0x7af   :  { %v1330_v21 = vpop.eup %1329  ;;  %v88_v19 = vrot.slane %v72_v11, 4 }
 0x7b0   :  { %508 = vrot.lane.b32.xlu1 %v1330_v21, %s1363_s18 }
 0x7b1   :  { %v104_v29 = vadd.f32 %v88_v19, %v1411_v10  ;;  %v278_v33 = vpop.permute.xlu0 %277 }
 0x7b4   :  { %125 = vperm.xlu1 %1269, %v20_v44  }
 0x7b8   :  { %1270 = vset.pattern.permute.xlu1 %v1359_v2 }
 0x7b9   :  { %201 = vperm.xlu1 %1270, %v20_v44  }
 0x7bd   :  { %1272 = vset.pattern.permute.xlu1 %v1365_v54 }
 0x822   :  { %v509_v48 = vpop.permute.xlu1 %508 }
 0x823   :  { %v511_v50 = vmul.f32 %v509_v48, %v494_v39 }
 0x825   :  { %v769_v53 = vcombine.high %v511_v50, %v511_v50  ;;  %524 = vperm.xlu0 %1274, %v511_v50   ;;  %514 = vperm.xlu1 %1272, %v511_v50  }
 0x827   :  { %v776_v31 = vrot.slane %v769_v53, %v1495_v60 }
 0x829   :  { %v777_v55 = vcombine.high %v776_v31, %v776_v31  ;;  %v1600_v59 = vrot.slane %v776_v31, %v1495_v60  ;;  %1273 = vset.pattern.permute.xlu1 %v1366_v57  ;;  %1276 = vset.pattern.permute.xlu0 %v1358_v0 }
 0x82a   :  { %519 = vperm.xlu1 %1273, %v511_v50  }
 0x82b   :  { %v920_v51 = vrot.slane %v1600_v59, %v1396_v7  ;;  %v1607_v28 = vrot.slane %v777_v55, %v1495_v60 }
 0x82d   :  { %v1611_v61 = vsel %vm973_vm2, %v1565_v40, %v920_v51  ;;  %v924_v62 = vrot.slane %v1607_v28, %v1396_v7 }
 0x82e   :  { %1275 = vset.pattern.permute.xlu1 %v1367_v58 }
 0x82f   :  { %529 = vperm.xlu1 %1275, %v511_v50   ;;  %v1618_v63 = vsel %vm973_vm2, %v1572_v42, %v924_v62  ;;  %v126_v1 = vpop.permute.xlu1 %125  ;;  %v300_v42 = vmul.f32 %v1436_v24, %v278_v33 }
 0x830   :  { %v148_v40 = vmul.f32 %v1431_v23, %v126_v1 }
 0x831   :  { %v316_v41 = vrot.slane %v300_v42, 4 }
 0x832   :  { %v164_v30 = vrot.slane %v148_v40, 4 }
 0x833   :  { %1277 = vset.pattern.permute.xlu1 %v1360_v3 }
 0x834   :  { %v202_v12 = vpop.permute.xlu1 %201  ;;  %v180_v35 = vadd.f32 %v164_v30, %v104_v29 }
 0x835   :  { %v224_v32 = vmul.f32 %v1426_v22, %v202_v12  ;;  %v21_v12 = vld [vmem:[%s1880_s0 + $0x14] sm:$0xf] }
 0x837   :  { %v240_v49 = vrot.slane %v224_v32, 4 }
 0x839   :  { %v256_v44 = vadd.f32 %v240_v49, %v180_v35 }
 0x83b   :  { %v332_v53 = vadd.f32 %v316_v41, %v256_v44 }
 0x8a0   :  { %v515_v25 = vpop.permute.xlu1 %514  ;;  %v525_v36 = vpop.permute.xlu0 %524 }
 0x8a1   :  { %v527_v45 = vmul.f32 %v525_v36, %v1471_v26  ;;  %v517_v46 = vmul.f32 %v515_v25, %v1474_v27 }
 0x8a5   :  { %v520_v34 = vpop.permute.xlu1 %519 }
 0x8a6   :  { %v522_v39 = vmul.f32 %v520_v34, %v1401_v8 }
 0x8a8   :  { %v533_v48 = vadd.f32 %v522_v39, %v517_v46 }
 0x8aa   :  { %v530_v43 = vpop.permute.xlu1 %529 }
 0x8ab   :  { %v532_v21 = vmul.f32 %v530_v43, %v1406_v9 }
 0x8ad   :  { %v534_v50 = vadd.f32 %v532_v21, %v527_v45 }
 0x8af   :  { %v535_v31 = vadd.f32 %v534_v50, %v533_v48 }
 0x8b1   :  { %v536_v55 = vadd.f32 %v535_v31, %v332_v53 }
 0x8b3   :  { %1331 = vtanh.f32 %v536_v55 }
 0x8c0   :  { %v1332_v51 = vpop.eup %1331 }
 0x8c1   :  { %542 = vrot.lane.b32.xlu1 %v1332_v51, %s1362_s17  ;;  %v538_v62 = vmul.f32 0.5, %v1332_v51 }
 0x8c3   :  { %v539_v1 = vadd.f32 0.5, %v538_v62 }
 0x8c5   :  { %v540_v19 = vmul.f32 %v539_v1, %v1592_v47 }
 0x933   :  { %v543_v5 = vpop.permute.xlu1 %542 }
 0x934   :  { %v545_v11 = vmul.f32 %v543_v5, %v539_v1 }
 0x936   :  { %547 = vrot.lane.b32.xlu0 %v545_v11, %s1363_s18 }
 0x93a   :  { %51 = vperm.xlu0 %1276, %v21_v12  }
 0x93e   :  { %1279 = vset.pattern.permute.xlu0 %v1361_v4 }
 0x93f   :  { %281 = vperm.xlu0 %1279, %v21_v12  }
 0x943   :  { %1282 = vset.pattern.permute.xlu0 %v1364_v52 }
 0x9a8   :  { %v548_v40 = vpop.permute.xlu0 %547 }
 0x9a9   :  { %v1638_v25 = vadd.f32 %v548_v40, %v540_v19 }
 0x9ab   :  { %1333 = vtanh.f32 %v1638_v25 }
 0x9b5   :  { %v52_v44 = vpop.permute.xlu0 %51 }
 0x9b6   :  { %v73_v45 = vmul.f32 %v1417_v13, %v52_v44 }
 0x9b8   :  { %v1334_v29 = vpop.eup %1333  ;;  %v89_v21 = vrot.slane %v73_v45, 4 }
 0x9b9   :  { %553 = vrot.lane.b32.xlu1 %v1334_v29, %s1363_s18 }
 0x9ba   :  { %v105_v50 = vadd.f32 %v89_v21, %v1411_v10  ;;  %v282_v55 = vpop.permute.xlu0 %281 }
 0x9bd   :  { %129 = vperm.xlu1 %1277, %v21_v12  }
 0x9c1   :  { %1278 = vset.pattern.permute.xlu1 %v1359_v2 }
 0x9c2   :  { %205 = vperm.xlu1 %1278, %v21_v12  }
 0x9c6   :  { %1280 = vset.pattern.permute.xlu1 %v1365_v54 }
 0xa2b   :  { %v554_v30 = vpop.permute.xlu1 %553 }
 0xa2c   :  { %v556_v32 = vmul.f32 %v554_v30, %v539_v1 }
 0xa2e   :  { %v794_v33 = vcombine.high %v556_v32, %v556_v32  ;;  %569 = vperm.xlu0 %1282, %v556_v32   ;;  %559 = vperm.xlu1 %1280, %v556_v32  }
 0xa30   :  { %v801_v47 = vrot.slane %v794_v33, %v1495_v60 }
 0xa32   :  { %v802_v34 = vcombine.high %v801_v47, %v801_v47  ;;  %1281 = vset.pattern.permute.xlu1 %v1366_v57  ;;  %1284 = vset.pattern.permute.xlu0 %v1358_v0  ;;  %v1648_v42 = vrot.slane %v801_v47, %v1495_v60 }
 0xa33   :  { %564 = vperm.xlu1 %1281, %v556_v32  }
 0xa34   :  { %v930_v35 = vrot.slane %v1648_v42, %v1396_v7  ;;  %v1653_v49 = vrot.slane %v802_v34, %v1495_v60 }
 0xa36   :  { %v1657_v36 = vsel %vm976_vm3, %v1611_v61, %v930_v35  ;;  %v934_v39 = vrot.slane %v1653_v49, %v1396_v7 }
 0xa37   :  { %1283 = vset.pattern.permute.xlu1 %v1367_v58 }
 0xa38   :  { %574 = vperm.xlu1 %1283, %v556_v32   ;;  %v1664_v41 = vsel %vm976_vm3, %v1618_v63, %v934_v39  ;;  %v130_v43 = vpop.permute.xlu1 %129  ;;  %v301_v63 = vmul.f32 %v1436_v24, %v282_v55 }
 0xa39   :  { %v149_v61 = vmul.f32 %v1431_v23, %v130_v43 }
 0xa3a   :  { %v317_v12 = vrot.slane %v301_v63, 4 }
 0xa3b   :  { %v165_v53 = vrot.slane %v149_v61, 4  ;;  %v22_v61 = vld [vmem:[%s1880_s0 + $0x18] sm:$0xf] }
 0xa3c   :  { %1285 = vset.pattern.permute.xlu1 %v1360_v3 }
 0xa3d   :  { %v206_v46 = vpop.permute.xlu1 %205  ;;  %v181_v62 = vadd.f32 %v165_v53, %v105_v50 }
 0xa3e   :  { %v225_v31 = vmul.f32 %v1426_v22, %v206_v46 }
 0xa40   :  { %v241_v1 = vrot.slane %v225_v31, 4 }
 0xa42   :  { %v257_v40 = vadd.f32 %v241_v1, %v181_v62 }
 0xa44   :  { %v333_v34 = vadd.f32 %v317_v12, %v257_v40 }
 0xaa9   :  { %v560_v48 = vpop.permute.xlu1 %559  ;;  %v570_v5 = vpop.permute.xlu0 %569 }
 0xaaa   :  { %v572_v29 = vmul.f32 %v570_v5, %v1471_v26  ;;  %v562_v30 = vmul.f32 %v560_v48, %v1474_v27 }
 0xaae   :  { %v565_v51 = vpop.permute.xlu1 %564 }
 0xaaf   :  { %v567_v11 = vmul.f32 %v565_v51, %v1401_v8 }
 0xab1   :  { %v578_v33 = vadd.f32 %v567_v11, %v562_v30 }
 0xab3   :  { %v575_v19 = vpop.permute.xlu1 %574 }
 0xab4   :  { %v577_v32 = vmul.f32 %v575_v19, %v1406_v9 }
 0xab6   :  { %v579_v47 = vadd.f32 %v577_v32, %v572_v29 }
 0xab8   :  { %v580_v35 = vadd.f32 %v579_v47, %v578_v33 }
 0xaba   :  { %v581_v39 = vadd.f32 %v580_v35, %v333_v34 }
 0xabc   :  { %1335 = vtanh.f32 %v581_v39 }
 0xac9   :  { %v1336_v43 = vpop.eup %1335 }
 0xaca   :  { %587 = vrot.lane.b32.xlu1 %v1336_v43, %s1362_s17  ;;  %v583_v44 = vmul.f32 0.5, %v1336_v43 }
 0xacc   :  { %v584_v45 = vadd.f32 0.5, %v583_v44 }
 0xace   :  { %v585_v48 = vmul.f32 %v584_v45, %v1638_v25 }
 0xb3c   :  { %v588_v46 = vpop.permute.xlu1 %587 }
 0xb3d   :  { %v590_v21 = vmul.f32 %v588_v46, %v584_v45 }
 0xb3f   :  { %592 = vrot.lane.b32.xlu0 %v590_v21, %s1363_s18 }
 0xb43   :  { %56 = vperm.xlu0 %1284, %v22_v61  }
 0xb47   :  { %1287 = vset.pattern.permute.xlu0 %v1361_v4 }
 0xb48   :  { %285 = vperm.xlu0 %1287, %v22_v61  }
 0xb4c   :  { %1290 = vset.pattern.permute.xlu0 %v1364_v52 }
 0xbb1   :  { %v593_v50 = vpop.permute.xlu0 %592 }
 0xbb2   :  { %v1684_v53 = vadd.f32 %v593_v50, %v585_v48 }
 0xbb4   :  { %1337 = vtanh.f32 %v1684_v53 }
 0xbbe   :  { %v57_v29 = vpop.permute.xlu0 %56 }
 0xbbf   :  { %v74_v30 = vmul.f32 %v1417_v13, %v57_v29 }
 0xbc1   :  { %v1338_v31 = vpop.eup %1337  ;;  %v90_v33 = vrot.slane %v74_v30, 4 }
 0xbc2   :  { %598 = vrot.lane.b32.xlu1 %v1338_v31, %s1363_s18 }
 0xbc3   :  { %v106_v34 = vadd.f32 %v90_v33, %v1411_v10  ;;  %v286_v43 = vpop.permute.xlu0 %285 }
 0xbc6   :  { %133 = vperm.xlu1 %1285, %v22_v61  }
 0xbca   :  { %1286 = vset.pattern.permute.xlu1 %v1359_v2 }
 0xbcb   :  { %209 = vperm.xlu1 %1286, %v22_v61  }
 0xbcf   :  { %1288 = vset.pattern.permute.xlu1 %v1365_v54 }
 0xc34   :  { %v599_v55 = vpop.permute.xlu1 %598 }
 0xc35   :  { %v601_v51 = vmul.f32 %v599_v55, %v584_v45 }
 0xc37   :  { %v819_v63 = vcombine.high %v601_v51, %v601_v51  ;;  %614 = vperm.xlu0 %1290, %v601_v51   ;;  %604 = vperm.xlu1 %1288, %v601_v51  }
 0xc39   :  { %v826_v25 = vrot.slane %v819_v63, %v1495_v60 }
 0xc3b   :  { %v1692_v62 = vrot.slane %v826_v25, %v1495_v60  ;;  %1289 = vset.pattern.permute.xlu1 %v1366_v57  ;;  %1292 = vset.pattern.permute.xlu0 %v1358_v0  ;;  %v827_v1 = vcombine.high %v826_v25, %v826_v25 }
 0xc3c   :  { %609 = vperm.xlu1 %1289, %v601_v51  }
 0xc3d   :  { %v940_v5 = vrot.slane %v1692_v62, %v1396_v7  ;;  %v1699_v11 = vrot.slane %v827_v1, %v1495_v60 }
 0xc3f   :  { %v1703_v12 = vsel %vm979_vm4, %v1657_v36, %v940_v5  ;;  %v944_v19 = vrot.slane %v1699_v11, %v1396_v7 }
 0xc40   :  { %1291 = vset.pattern.permute.xlu1 %v1367_v58 }
 0xc41   :  { %619 = vperm.xlu1 %1291, %v601_v51   ;;  %v1710_v0 = vsel %vm979_vm4, %v1664_v41, %v944_v19  ;;  %v134_v40 = vpop.permute.xlu1 %133  ;;  %v302_v41 = vmul.f32 %v1436_v24, %v286_v43 }
 0xc42   :  { %v150_v36 = vmul.f32 %v1431_v23, %v134_v40 }
 0xc43   :  { %v318_v61 = vrot.slane %v302_v41, 4 }
 0xc44   :  { %v166_v35 = vrot.slane %v150_v36, 4 }
 0xc45   :  { %1293 = vset.pattern.permute.xlu1 %v1360_v3 }
 0xc46   :  { %v210_v32 = vpop.permute.xlu1 %209  ;;  %v182_v45 = vadd.f32 %v166_v35, %v106_v34 }
 0xc47   :  { %v226_v39 = vmul.f32 %v1426_v22, %v210_v32  ;;  %v23_v32 = vld [vmem:[%s1880_s0 + $0x1c] sm:$0xf] }
 0xc49   :  { %v242_v3 = vrot.slane %v226_v39, 4 }
 0xc4b   :  { %v258_v50 = vadd.f32 %v242_v3, %v182_v45 }
 0xc4d   :  { %v334_v25 = vadd.f32 %v318_v61, %v258_v50 }
 0xcb2   :  { %v605_v47 = vpop.permute.xlu1 %604  ;;  %v615_v46 = vpop.permute.xlu0 %614 }
 0xcb3   :  { %v617_v31 = vmul.f32 %v615_v46, %v1471_v26  ;;  %v607_v55 = vmul.f32 %v605_v47, %v1474_v27 }
 0xcb7   :  { %v610_v44 = vpop.permute.xlu1 %609 }
 0xcb8   :  { %v612_v21 = vmul.f32 %v610_v44, %v1401_v8 }
 0xcba   :  { %v623_v51 = vadd.f32 %v612_v21, %v607_v55  ;;  %v1355_v55 = vld [vmem:[%s1881_s1] sm:$0xff] }
 0xcbc   :  { %v620_v48 = vpop.permute.xlu1 %619 }
 0xcbd   :  { %v622_v10 = vmul.f32 %v620_v48, %v1406_v9 }
 0xcbf   :  { %v624_v63 = vadd.f32 %v622_v10, %v617_v31 }
 0xcc1   :  { %v625_v1 = vadd.f32 %v624_v63, %v623_v51 }
 0xcc3   :  { %v626_v5 = vadd.f32 %v625_v1, %v334_v25 }
 0xcc5   :  { %1339 = vtanh.f32 %v626_v5 }
 0xcd2   :  { %v1340_v19 = vpop.eup %1339 }
 0xcd3   :  { %632 = vrot.lane.b32.xlu1 %v1340_v19, %s1362_s17  ;;  %v628_v40 = vmul.f32 0.5, %v1340_v19 }
 0xcd5   :  { %v629_v8 = vadd.f32 0.5, %v628_v40 }
 0xcd7   :  { %v630_v9 = vmul.f32 %v629_v8, %v1684_v53 }
 0xd45   :  { %v633_v29 = vpop.permute.xlu1 %632 }
 0xd46   :  { %v635_v30 = vmul.f32 %v633_v29, %v629_v8 }
 0xd48   :  { %637 = vrot.lane.b32.xlu0 %v635_v30, %s1363_s18 }
 0xd4c   :  { %61 = vperm.xlu0 %1292, %v23_v32  }
 0xd50   :  { %1295 = vset.pattern.permute.xlu0 %v1361_v4 }
 0xd51   :  { %289 = vperm.xlu0 %1295, %v23_v32  }
 0xd55   :  { %1298 = vset.pattern.permute.xlu0 %v1364_v52 }
 0xdba   :  { %v638_v33 = vpop.permute.xlu0 %637 }
 0xdbb   :  { %v1730_v36 = vadd.f32 %v638_v33, %v630_v9 }
 0xdbd   :  { %1341 = vtanh.f32 %v1730_v36 }
 0xdc7   :  { %v62_v21 = vpop.permute.xlu0 %61 }
 0xdc8   :  { %v75_v61 = vmul.f32 %v1417_v13, %v62_v21 }
 0xdca   :  { %v1342_v47 = vpop.eup %1341  ;;  %v91_v50 = vrot.slane %v75_v61, 4 }
 0xdcb   :  { %643 = vrot.lane.b32.xlu1 %v1342_v47, %s1363_s18 }
 0xdcc   :  { %v107_v10 = vadd.f32 %v1355_v55, %v91_v50  ;;  %v290_v63 = vpop.permute.xlu0 %289 }
 0xdcd   :  { %v303_v1 = vmul.f32 %v1436_v24, %v290_v63  ;;  %v817_v63 = vcombine.high %v1648_v42, %v1648_v42  ;;  %v843_v42 = vcombine.high %v1699_v11, %v1699_v11 }
 0xdcf   :  { %137 = vperm.xlu1 %1293, %v23_v32   ;;  %v1011_v11 = vrot.slane %v817_v63, %v1396_v7 }
 0xdd3   :  { %1294 = vset.pattern.permute.xlu1 %v1359_v2 }
 0xdd4   :  { %213 = vperm.xlu1 %1294, %v23_v32  }
 0xdd8   :  { %1296 = vset.pattern.permute.xlu1 %v1365_v54 }
 0xe3d   :  { %v644_v4 = vpop.permute.xlu1 %643 }
 0xe3e   :  { %v646_v34 = vmul.f32 %v644_v4, %v629_v8  ;;  %v319_v8 = vrot.slane %v303_v1, 4 }
 0xe40   :  { %v844_v35 = vcombine.high %v646_v34, %v646_v34  ;;  %659 = vperm.xlu0 %1298, %v646_v34   ;;  %649 = vperm.xlu1 %1296, %v646_v34  }
 0xe42   :  { %v851_v53 = vrot.slane %v844_v35, %v1495_v60 }
 0xe44   :  { %v1738_v39 = vrot.slane %v851_v53, %v1495_v60  ;;  %1297 = vset.pattern.permute.xlu1 %v1366_v57  ;;  %1300 = vset.pattern.permute.xlu0 %v1365_v54  ;;  %v852_v43 = vcombine.high %v851_v53, %v851_v53 }
 0xe45   :  { %654 = vperm.xlu1 %1297, %v646_v34  }
 0xe46   :  { %v950_v2 = vrot.slane %v1738_v39, %v1396_v7  ;;  %v1745_v44 = vrot.slane %v852_v43, %v1495_v60  ;;  %v867_v55 = vcombine.high %v1738_v39, %v1738_v39 }
 0xe48   :  { %v1749_v41 = vsel %vm982_vm5, %v1703_v12, %v950_v2  ;;  %v954_v45 = vrot.slane %v1745_v44, %v1396_v7 }
 0xe49   :  { %1299 = vset.pattern.permute.xlu1 %v1367_v58 }
 0xe4a   :  { %664 = vperm.xlu1 %1299, %v646_v34   ;;  %v1756_v3 = vsel %vm982_vm5, %v1710_v0, %v954_v45  ;;  %v138_v46 = vpop.permute.xlu1 %137 }
 0xe4b   :  { %v151_v12 = vmul.f32 %v1431_v23, %v138_v46  ;;  %v1356_v23 = vld [vmem:[%s1881_s1 + $0x8] sm:$0xff] }
 0xe4d   :  { %v167_v51 = vrot.slane %v151_v12, 4  ;;  %v715_v12 = vcombine.high %v1507_v56, %v1507_v56  ;;  %v743_v56 = vcombine.high %v1510_v18, %v1510_v18  ;;  %v792_v18 = vcombine.high %v1600_v59, %v1600_v59 }
 0xe4e   :  { %1301 = vset.pattern.permute.xlu1 %v1366_v57 }
 0xe4f   :  { %v214_v48 = vpop.permute.xlu1 %213  ;;  %v183_v5 = vadd.f32 %v167_v51, %v107_v10  ;;  %v1051_v51 = vrot.slane %v715_v12, %v1396_v7  ;;  %v14_v12 = vld [vmem:[%s1881_s1 + $0x18] sm:$0xff] }
 0xe50   :  { %v227_v0 = vmul.f32 %v1426_v22, %v214_v48  ;;  %v1357_v22 = vld [vmem:[%s1881_s1 + $0x10] sm:$0xff]  ;;  %v1123_v63 = vrot.slane %v14_v12, %v142_v15 }
 0xe52   :  { %v243_v19 = vrot.slane %v227_v0, 4  ;;  %v842_v0 = vcombine.high %v1692_v62, %v1692_v62  ;;  %v818_v62 = vcombine.high %v1653_v49, %v1653_v49  ;;  %v793_v49 = vcombine.high %v1607_v28, %v1607_v28 }
 0xe54   :  { %v259_v30 = vadd.f32 %v243_v19, %v183_v5  ;;  %v767_v5 = vcombine.high %v1554_v37, %v1554_v37  ;;  %v768_v37 = vcombine.high %v1559_v38, %v1559_v38  ;;  %v1021_v38 = vrot.slane %v792_v18, %v1396_v7 }
 0xe55   :  { %v1015_v28 = vrot.slane %v818_v62, %v1396_v7 }
 0xe56   :  { %v335_v4 = vadd.f32 %v319_v8, %v259_v30  ;;  %v1005_v30 = vrot.slane %v843_v42, %v1396_v7 }
 0xebb   :  { %v650_v31 = vpop.permute.xlu1 %649  ;;  %v660_v13 = vpop.permute.xlu0 %659 }
 0xebc   :  { %v662_v32 = vmul.f32 %v660_v13, %v1471_v26  ;;  %v652_v9 = vmul.f32 %v650_v31, %v1474_v27 }
 0xec0   :  { %v655_v25 = vpop.permute.xlu1 %654 }
 0xec1   :  { %v657_v40 = vmul.f32 %v1356_v23, %v655_v25  ;;  %v742_v25 = vcombine.high %v1502_v17, %v1502_v17  ;;  %v991_v17 = vrot.slane %v867_v55, %v1396_v7  ;;  %v1001_v23 = vrot.slane %v842_v0, %v1396_v7 }
 0xec2   :  { %v1089_v55 = vrot.slane %v14_v12, %v1396_v7  ;;  %v1138_v0 = vsub.s32 5, %v1393_v6 }
 0xec3   :  { %v668_v33 = vadd.f32 %v657_v40, %v652_v9  ;;  %v1031_v9 = vrot.slane %v767_v5, %v1396_v7 }
 0xec4   :  { %v1139_v5 = vrot.slane %v14_v12, %v1138_v0 }
 0xec5   :  { %v665_v29 = vpop.permute.xlu1 %664 }
 0xec6   :  { %v667_v24 = vmul.f32 %v1357_v22, %v665_v29 }
 0xec8   :  { %v669_v47 = vadd.f32 %v667_v24, %v662_v32 }
 0xeca   :  { %v670_v34 = vadd.f32 %v669_v47, %v668_v33  ;;  %v1041_v33 = vrot.slane %v742_v25, %v1396_v7 }
 0xecc   :  { %v671_v35 = vadd.f32 %v670_v34, %v335_v4  ;;  %v1035_v4 = vrot.slane %v768_v37, %v1396_v7 }
 0xece   :  { %1343 = vtanh.f32 %v671_v35 }
 0xedb   :  { %v1344_v53 = vpop.eup %1343 }
 0xedc   :  { %677 = vrot.lane.b32.xlu1 %v1344_v53, %s1362_s17  ;;  %v673_v43 = vmul.f32 0.5, %v1344_v53 }
 0xede   :  { %v674_v2 = vadd.f32 0.5, %v673_v43  ;;  %v1045_v43 = vrot.slane %v743_v56, %v1396_v7 }
 0xee0   :  { %v675_v27 = vmul.f32 %v674_v2, %v1730_v36  ;;  %v716_v36 = vcombine.high %v1515_v20, %v1515_v20  ;;  %v868_v20 = vcombine.high %v1745_v44, %v1745_v44 }
 0xee2   :  { %v1055_v34 = vrot.slane %v716_v36, %v1396_v7 }
 0xf4e   :  { %v678_v45 = vpop.permute.xlu1 %677 }
 0xf4f   :  { %v680_v26 = vmul.f32 %v678_v45, %v674_v2 }
 0xf51   :  { %682 = vrot.lane.b32.xlu0 %v680_v26, %s1363_s18 }
 0xfc3   :  { %v683_v46 = vpop.permute.xlu0 %682 }
 0xfc4   :  { %v685_v21 = vadd.f32 %v683_v46, %v675_v27 }
 0xfc6   :  { %1345 = vtanh.f32 %v685_v21 }
 0xfd3   :  { %v1346_v61 = vpop.eup %1345 }
 0xfd4   :  { %688 = vrot.lane.b32.xlu1 %v1346_v61, %s1363_s18 }
0x1046   :  { %v689_v48 = vpop.permute.xlu1 %688 }
0x1047   :  { %v691_v50 = vmul.f32 %v689_v48, %v674_v2 }
0x1049   :  { %v870_v31 = vcombine.high %v691_v50, %v691_v50 }
0x104b   :  { %v877_v10 = vrot.slane %v870_v31, %v1495_v60 }
0x104d   :  { %v878_v39 = vcombine.high %v877_v10, %v877_v10  ;;  %v885_v1 = vrot.slane %v877_v10, %v1495_v60 }
0x104f   :  { %v892_v19 = vrot.slane %v878_v39, %v1495_v60  ;;  %v893_v13 = vcombine.high %v885_v1, %v885_v1  ;;  %v960_v44 = vrot.slane %v885_v1, %v1396_v7  ;;  %v995_v60 = vrot.slane %v868_v20, %v1396_v7 }
0x1051   :  { %v894_v40 = vcombine.high %v892_v19, %v892_v19  ;;  %v1058_v59 = vsel %vm967_vm0, %v893_v13, %v991_v17  ;;  %v986_v8 = vsel %vm985_vm6, %v1749_v41, %v960_v44  ;;  %v1025_v41 = vrot.slane %v793_v49, %v1396_v7 }
0x1052   :  { %v1060_v29 = vsel %vm970_vm1, %v1058_v59, %v1001_v23  ;;  %1113 = vperm.xlu1 %1301, %v986_v8   ;;  %1078 = vperm.xlu0 %1300, %v986_v8   ;;  %v964_v26 = vrot.slane %v892_v19, %v1396_v7  ;;  %v1170_v23 = vsub.s32 6, %v1393_v6 }
0x1053   :  { %v1059_v32 = vsel %vm967_vm0, %v894_v40, %v995_v60  ;;  %v1062_v22 = vsel %vm973_vm2, %v1060_v29, %v1011_v11 }
0x1054   :  { %v1061_v24 = vsel %vm970_vm1, %v1059_v32, %v1005_v30  ;;  %v1064_v47 = vsel %vm976_vm3, %v1062_v22, %v1021_v38  ;;  %v987_v48 = vsel %vm985_vm6, %v1756_v3, %v964_v26  ;;  %v1171_v59 = vrot.slane %v14_v12, %v1170_v23 }
0x1055   :  { %v1063_v35 = vsel %vm973_vm2, %v1061_v24, %v1015_v28  ;;  %v1066_v53 = vsel %vm979_vm4, %v1064_v47, %v1031_v9  ;;  %v1202_v38 = vsub.s32 7, %v1393_v6  ;;  %v1187_v32 = vrot.slane %v14_v12, %v294_v16 }
0x1056   :  { %1303 = vset.pattern.permute.xlu1 %v1367_v58  ;;  %1302 = vset.pattern.permute.xlu0 %v1364_v52  ;;  %v1065_v2 = vsel %vm976_vm3, %v1063_v35, %v1025_v41  ;;  %v1068_v45 = vsel %vm982_vm5, %v1066_v53, %v1041_v33 }
0x1057   :  { %1177 = vperm.xlu1 %1303, %v986_v8   ;;  %1145 = vperm.xlu0 %1302, %v986_v8   ;;  %v1067_v27 = vsel %vm979_vm4, %v1065_v2, %v1035_v4  ;;  %v1070_v46 = vsel %vm985_vm6, %v1068_v45, %v1051_v51  ;;  %v1203_v24 = vrot.slane %v14_v12, %v1202_v38 }
0x1058   :  { %v1069_v21 = vsel %vm982_vm5, %v1067_v27, %v1045_v43 }
0x1059   :  { %v1071_v61 = vsel %vm985_vm6, %v1069_v21, %v1055_v34 }
0x105b   :  { %1304 = vset.pattern.permute.xlu1 %v1365_v54  ;;  %1305 = vset.pattern.permute.xlu0 %v1366_v57 }
0x105c   :  { %1117 = vperm.xlu0 %1305, %v987_v48   ;;  %1083 = vperm.xlu1 %1304, %v987_v48  }
0x1060   :  { %1310 = vset.pattern.permute.xlu0 %v1365_v54  ;;  %1306 = vset.pattern.permute.xlu1 %v1364_v52 }
0x1061   :  { %1149 = vperm.xlu1 %1306, %v987_v48   ;;  %1101 = vperm.xlu0 %1310, %v1071_v61  }
0x1065   :  { %1307 = vset.pattern.permute.xlu1 %v1365_v54  ;;  %1312 = vset.pattern.permute.xlu0 %v1364_v52 }
0x1066   :  { %1096 = vperm.xlu1 %1307, %v1070_v46   ;;  %1165 = vperm.xlu0 %1312, %v1071_v61  }
0x106a   :  { %1308 = vset.pattern.permute.xlu1 %v1366_v57  ;;  %1313 = vset.pattern.permute.xlu0 %v1367_v58 }
0x106b   :  { %1129 = vperm.xlu1 %1308, %v1070_v46   ;;  %1181 = vperm.xlu0 %1313, %v987_v48  }
0x106f   :  { %1309 = vset.pattern.permute.xlu1 %v1364_v52  ;;  %v15_v52 = vld [vmem:[%s1881_s1 + $0x20] sm:$0xff] }
0x1070   :  { %1161 = vperm.xlu1 %1309, %v1070_v46   ;;  %v1075_v36 = vrot.slane %v15_v52, %v1396_v7  ;;  %v1155_v7 = vrot.slane %v14_v12, %v218_v14 }
0x1074   :  { %1311 = vset.pattern.permute.xlu1 %v1366_v57 }
0x1075   :  { %1133 = vperm.xlu1 %1311, %v1071_v61  }
0x1079   :  { %1314 = vset.pattern.permute.xlu1 %v1367_v58  ;;  %v1106_v58 = vsub.s32 4, %v1393_v6 }
0x107a   :  { %1193 = vperm.xlu1 %1314, %v1070_v46  }
0x107b   :  { %v1107_v25 = vrot.slane %v14_v12, %v1106_v58 }
0x107e   :  { %1197 = vperm.xlu1 %1314, %v1071_v61  }
0x10cd   :  { %v1114_v54 = vpop.permute.xlu1 %1113  ;;  %v1079_v50 = vpop.permute.xlu0 %1078 }
0x10ce   :  { %v1090_v51 = vmul.f32 %v1089_v55, %v1079_v50  ;;  %v1124_v62 = vmul.f32 %v1123_v63, %v1114_v54 }
0x10d0   :  { %v1092_v1 = vadd.f32 %v1090_v51, %v1075_v36 }
0x10d2   :  { %v1178_v3 = vpop.permute.xlu1 %1177  ;;  %v1146_v10 = vpop.permute.xlu0 %1145 }
0x10d3   :  { %v1156_v40 = vmul.f32 %v1155_v7, %v1146_v10  ;;  %v1188_v4 = vmul.f32 %v1187_v32, %v1178_v3 }
0x10d7   :  { %v1084_v31 = vpop.permute.xlu1 %1083  ;;  %v1118_v56 = vpop.permute.xlu0 %1117 }
0x10d8   :  { %v1091_v13 = vmul.f32 %v1089_v55, %v1084_v31  ;;  %v1125_v28 = vmul.f32 %v1123_v63, %v1118_v56 }
0x10da   :  { %v1093_v49 = vadd.f32 %v1091_v13, %v1075_v36 }
0x10dc   :  { %v1150_v57 = vpop.permute.xlu1 %1149  ;;  %v1102_v18 = vpop.permute.xlu0 %1101 }
0x10dd   :  { %v1109_v37 = vmul.f32 %v1107_v25, %v1102_v18  ;;  %v1157_v33 = vmul.f32 %v1155_v7, %v1150_v57 }
0x10df   :  { %v1111_v8 = vadd.f32 %v1109_v37, %v1093_v49 }
0x10e1   :  { %v1097_v39 = vpop.permute.xlu1 %1096  ;;  %v1166_v60 = vpop.permute.xlu0 %1165  ;;  %v1127_v14 = vadd.f32 %v1125_v28, %v1111_v8 }
0x10e2   :  { %v1108_v20 = vmul.f32 %v1107_v25, %v1097_v39  ;;  %v1173_v35 = vmul.f32 %v1171_v59, %v1166_v60 }
0x10e4   :  { %v1110_v42 = vadd.f32 %v1108_v20, %v1092_v1 }
0x10e6   :  { %v1126_v17 = vadd.f32 %v1124_v62, %v1110_v42  ;;  %v1130_v19 = vpop.permute.xlu1 %1129  ;;  %v1182_v34 = vpop.permute.xlu0 %1181 }
0x10e7   :  { %v1140_v44 = vmul.f32 %v1139_v5, %v1130_v19  ;;  %v1189_v26 = vmul.f32 %v1187_v32, %v1182_v34 }
0x10e9   :  { %v1142_v15 = vadd.f32 %v1140_v44, %v1126_v17 }
0x10eb   :  { %v1162_v11 = vpop.permute.xlu1 %1161  ;;  %v1158_v29 = vadd.f32 %v1156_v40, %v1142_v15 }
0x10ec   :  { %v1172_v30 = vmul.f32 %v1171_v59, %v1162_v11 }
0x10ee   :  { %v1174_v41 = vadd.f32 %v1172_v30, %v1158_v29 }
0x10f0   :  { %v1134_v9 = vpop.permute.xlu1 %1133  ;;  %v1190_v2 = vadd.f32 %v1188_v4, %v1174_v41 }
0x10f1   :  { %v1141_v22 = vmul.f32 %v1139_v5, %v1134_v9 }
0x10f3   :  { %v1143_v47 = vadd.f32 %v1141_v22, %v1127_v14 }
0x10f5   :  { %v1159_v53 = vadd.f32 %v1157_v33, %v1143_v47  ;;  %v1194_v43 = vpop.permute.xlu1 %1193 }
0x10f6   :  { %v1204_v45 = vmul.f32 %v1203_v24, %v1194_v43 }
0x10f7   :  { %v1175_v27 = vadd.f32 %v1173_v35, %v1159_v53 }
0x10f8   :  { %v1206_v46 = vadd.f32 %v1204_v45, %v1190_v2 }
0x10f9   :  { %v1198_v21 = vpop.permute.xlu1 %1197  ;;  %v1191_v6 = vadd.f32 %v1189_v26, %v1175_v27 }
0x10fa   :  { %v1227_v16 = vmul.f32 -1.442695, %v1206_v46  ;;  %v1205_v61 = vmul.f32 %v1203_v24, %v1198_v21 }
0x10fc   :  { %1347 = vpow2.f32 %v1227_v16  ;;  %v1207_v48 = vadd.f32 %v1205_v61, %v1191_v6 }
0x10fe   :  { %v1228_v54 = vmul.f32 -1.442695, %v1207_v48 }
0x1100   :  { %1349 = vpow2.f32 %v1228_v54 }
0x1109   :  { %v1348_v50 = vpop.eup %1347 }
0x110a   :  { %v1214_v12 = vadd.f32 1.0, %v1348_v50 }
0x110c   :  { %1351 = vrcp.f32 %v1214_v12 }
0x110d   :  { %v1350_v3 = vpop.eup %1349 }
0x110e   :  { %v1215_v31 = vadd.f32 1.0, %v1350_v3 }
0x1110   :  { %1353 = vrcp.f32 %v1215_v31 }
0x1119   :  { %v1352_v55 = vpop.eup %1351 }
0x111a   :  { %1221 = vst.msk [vmem:[%s1882_s2] sm:$0xff] %vm1220_vm7, %v1352_v55 }
0x111d   :  { %v1354_v10 = vpop.eup %1353 }
0x111e   :  { %1222 = vst.msk [vmem:[%s1882_s2 + $0x8] sm:$0xff] %vm1220_vm7, %v1354_v10 }

</bundles_post_ra>
